<compile_context>
chip_gen: v5e
topology: v5e:2x2
jax: 0.10.0
libtpu: 0.0.40
codegen_flags: <defaults>
</compile_context>

<pallas_src>
import functools
import math

import jax
import jax.numpy as jnp
from jax.experimental import pallas as pl
from jax.experimental.pallas import tpu as pltpu

LANES = 128


def graph_transformer_kernel(
    x_ref,                       # (B*S, Din_pad)  f32   lane-padded input
    w_fi_ref, b_fi_ref,          # (Din_pad, H), (1, H)
    w_qkv_ref, b_qkv_ref,        # (H, 3H), (1, 3H)      in_proj, pre-transposed
    w_o_ref, b_o_ref,            # (H, H), (1, H)        attn out_proj
    g1_ref, beta1_ref,           # (1, H), (1, H)        LayerNorm 1
    w_ff1_ref, b_ff1_ref,        # (H, FF) bf16, (1, FF) f32
    w_ff2_ref, b_ff2_ref,        # (FF, H) bf16, (1, H) f32
    g2_ref, beta2_ref,           # (1, H), (1, H)        LayerNorm 2
    w_fo_ref, b_fo_ref,          # (H, Dout_pad), (1, Dout_pad)
    out_ref,                     # (B*S, Dout_pad)
    *, num_heads, batch, seq,
):
    B, S = batch, seq
    H = w_fi_ref.shape[1]
    dh = H // num_heads
    eps = 1e-5

    # Hoist all small parameter reads (no re-broadcast inside loops).
    b_fi = b_fi_ref[...]
    b_qkv = b_qkv_ref[...]
    w_o = w_o_ref[...]
    b_o = b_o_ref[...]
    g1, beta1 = g1_ref[...], beta1_ref[...]
    b_ff1, b_ff2 = b_ff1_ref[...], b_ff2_ref[...]
    g2, beta2 = g2_ref[...], beta2_ref[...]
    b_fo = b_fo_ref[...]

    x = x_ref[...]                                    # (B*S, Din_pad)

    # ---------------- fc_in ----------------
    h = jnp.dot(x, w_fi_ref[...], preferred_element_type=jnp.float32) + b_fi

    # -------- multi-head self-attention (post-norm encoder layer) --------
    qkv = jnp.dot(h, w_qkv_ref[...], preferred_element_type=jnp.float32) + b_qkv
    # Lane-tile-aligned column splits (offsets are multiples of 128).
    q = qkv[:, 0 * H:1 * H].reshape(B, S, H)
    k = qkv[:, 1 * H:2 * H].reshape(B, S, H)
    v = qkv[:, 2 * H:3 * H].reshape(B, S, H)

    scale = 1.0 / math.sqrt(dh)
    attn_out = jnp.zeros((B * S, H), jnp.float32)
    for hi in range(num_heads):                      # static, tiny (4 iters)
        c0 = hi * dh
        qh = q[:, :, c0:c0 + dh]                     # (B, S, dh)
        kh = k[:, :, c0:c0 + dh]
        vh = v[:, :, c0:c0 + dh]
        # batched over B: (B, S, S)
        s = jnp.einsum('bqd,bkd->bqk', qh, kh,
                       preferred_element_type=jnp.float32) * scale
        s = s - jnp.max(s, axis=-1, keepdims=True)
        p = jnp.exp(s)
        p = p * pl.reciprocal(jnp.sum(p, axis=-1, keepdims=True), approx=True)
        ctx = jnp.einsum('bqk,bkd->bqd', p, vh,
                         preferred_element_type=jnp.float32)    # (B, S, dh)
        # Fold head-concat into out_proj: accumulate ctx_h @ w_o[rows of head].
        attn_out = attn_out + jnp.dot(
            ctx.reshape(B * S, dh), w_o[c0:c0 + dh, :],
            preferred_element_type=jnp.float32)
    attn_out = attn_out + b_o

    # residual + LayerNorm 1
    y = h + attn_out
    mu = jnp.mean(y, axis=-1, keepdims=True)
    var = jnp.mean((y - mu) ** 2, axis=-1, keepdims=True)
    y = (y - mu) * jax.lax.rsqrt(var + eps) * g1 + beta1

    # feed-forward (linear1 -> relu -> linear2), bf16 weights, f32 accumulation
    f = jnp.dot(y.astype(jnp.bfloat16), w_ff1_ref[...],
                preferred_element_type=jnp.float32) + b_ff1
    f = jnp.maximum(f, 0.0)
    f = jnp.dot(f.astype(jnp.bfloat16), w_ff2_ref[...],
                preferred_element_type=jnp.float32) + b_ff2

    # residual + LayerNorm 2
    z = y + f
    mu2 = jnp.mean(z, axis=-1, keepdims=True)
    var2 = jnp.mean((z - mu2) ** 2, axis=-1, keepdims=True)
    z = (z - mu2) * jax.lax.rsqrt(var2 + eps) * g2 + beta2

    # ---------------- fc_out (lane-padded, full-lane store) ----------------
    out_ref[...] = (jnp.dot(z, w_fo_ref[...], preferred_element_type=jnp.float32)
                    + b_fo)


def init_params(key, input_dim, output_dim, num_heads=4, hidden_dim=128, ff_dim=2048):
    """Deterministic synthetic parameters. Weights stored (in, out)."""
    ks = jax.random.split(key, 8)

    def w(k, shape):
        fan_in = shape[0]
        return (jax.random.normal(k, shape, jnp.float32)
                / jnp.sqrt(fan_in)).astype(jnp.float32)

    H, FF = hidden_dim, ff_dim
    return dict(
        w_fi=w(ks[0], (input_dim, H)),   b_fi=jnp.zeros((1, H), jnp.float32),
        w_qkv=w(ks[1], (H, 3 * H)),      b_qkv=jnp.zeros((1, 3 * H), jnp.float32),
        w_o=w(ks[2], (H, H)),            b_o=jnp.zeros((1, H), jnp.float32),
        g1=jnp.ones((1, H), jnp.float32), beta1=jnp.zeros((1, H), jnp.float32),
        w_ff1=w(ks[3], (H, FF)),         b_ff1=jnp.zeros((1, FF), jnp.float32),
        w_ff2=w(ks[4], (FF, H)),         b_ff2=jnp.zeros((1, H), jnp.float32),
        g2=jnp.ones((1, H), jnp.float32), beta2=jnp.zeros((1, H), jnp.float32),
        w_fo=w(ks[5], (H, output_dim)),  b_fo=jnp.zeros((1, output_dim), jnp.float32),
    )


def _pad_last(a, target):
    pad = target - a.shape[-1]
    if pad <= 0:
        return a
    cfg = [(0, 0)] * (a.ndim - 1) + [(0, pad)]
    return jnp.pad(a, cfg)


def _pad_first(a, target):
    pad = target - a.shape[0]
    if pad <= 0:
        return a
    cfg = [(0, pad)] + [(0, 0)] * (a.ndim - 1)
    return jnp.pad(a, cfg)


def graph_transformer_forward(x_sbd, params, num_heads=4):
    """x_sbd: (S, B, input_dim) float32 — PyTorch seq-first convention."""
    S, B, Din = x_sbd.shape
    H = params["w_fi"].shape[1]
    Dout = params["w_fo"].shape[1]

    din_pad = max(LANES, ((Din + LANES - 1) // LANES) * LANES)
    dout_pad = max(LANES, ((Dout + LANES - 1) // LANES) * LANES)

    # Flatten + lane-pad in the wrapper (free layout plumbing, lane-dense kernel I/O).
    x_flat = jnp.transpose(x_sbd, (1, 0, 2)).reshape(B * S, Din)
    x_flat = _pad_last(x_flat, din_pad)

    w_fi = _pad_first(params["w_fi"], din_pad)          # zero rows for pad lanes
    w_fo = _pad_last(params["w_fo"], dout_pad)
    b_fo = _pad_last(params["b_fo"], dout_pad)

    # Halve dominant weight DMA: FF weights in bf16 (f32 accumulation in-kernel).
    w_ff1 = params["w_ff1"].astype(jnp.bfloat16)
    w_ff2 = params["w_ff2"].astype(jnp.bfloat16)

    args = (
        x_flat,
        w_fi, params["b_fi"],
        params["w_qkv"], params["b_qkv"],
        params["w_o"], params["b_o"],
        params["g1"], params["beta1"],
        w_ff1, params["b_ff1"],
        w_ff2, params["b_ff2"],
        params["g2"], params["beta2"],
        w_fo, b_fo,
    )

    vmem_spec = pl.BlockSpec(memory_space=pltpu.MemorySpace.VMEM)
    out_flat = pl.pallas_call(
        functools.partial(graph_transformer_kernel,
                          num_heads=num_heads, batch=B, seq=S),
        out_shape=jax.ShapeDtypeStruct((B * S, dout_pad), jnp.float32),
        in_specs=[vmem_spec] * len(args),
        out_specs=vmem_spec,
    )(*args)

    out_bsd = out_flat[:, :Dout].reshape(B, S, Dout)
    return jnp.transpose(out_bsd, (1, 0, 2))            # back to (S, B, output_dim)


if __name__ == "__main__":
    S, B = 8, 2
    input_dim, hidden_dim, output_dim, num_heads = 16, 128, 8, 4

    key = jax.random.PRNGKey(0)
    kx, kp = jax.random.split(key)
    x = jax.random.normal(kx, (S, B, input_dim), jnp.float32)
    params = init_params(kp, input_dim, output_dim,
                         num_heads=num_heads, hidden_dim=hidden_dim, ff_dim=2048)

    out = graph_transformer_forward(x, params, num_heads=num_heads)
    out = jax.block_until_ready(out)
    assert out.shape == (S, B, output_dim)
    assert bool(jnp.all(jnp.isfinite(out)))
    print("KERNEL_OK")
</pallas_src>

<mosaic_0001>
module attributes {stable_mosaic.version = 11 : i64} {
  func.func @graph_transformer_kernel(%arg0: memref<16x128xf32, #tpu.memory_space<vmem>>, %arg1: memref<128x128xf32, #tpu.memory_space<vmem>>, %arg2: memref<1x128xf32, #tpu.memory_space<vmem>>, %arg3: memref<128x384xf32, #tpu.memory_space<vmem>>, %arg4: memref<1x384xf32, #tpu.memory_space<vmem>>, %arg5: memref<128x128xf32, #tpu.memory_space<vmem>>, %arg6: memref<1x128xf32, #tpu.memory_space<vmem>>, %arg7: memref<1x128xf32, #tpu.memory_space<vmem>>, %arg8: memref<1x128xf32, #tpu.memory_space<vmem>>, %arg9: memref<128x2048xbf16, #tpu.memory_space<vmem>>, %arg10: memref<1x2048xf32, #tpu.memory_space<vmem>>, %arg11: memref<2048x128xbf16, #tpu.memory_space<vmem>>, %arg12: memref<1x128xf32, #tpu.memory_space<vmem>>, %arg13: memref<1x128xf32, #tpu.memory_space<vmem>>, %arg14: memref<1x128xf32, #tpu.memory_space<vmem>>, %arg15: memref<128x128xf32, #tpu.memory_space<vmem>>, %arg16: memref<1x128xf32, #tpu.memory_space<vmem>>, %arg17: memref<16x128xf32, #tpu.memory_space<vmem>>) attributes {dimension_semantics = [], scalar_prefetch = 0 : i64, scratch_operands = 0 : i64, tpu.core_type = #tpu.core_type<tc>} {
    %c0 = arith.constant 0 : index
    %c0_0 = arith.constant 0 : index
    %0 = vector.load %arg2[%c0, %c0_0] : memref<1x128xf32, #tpu.memory_space<vmem>>, vector<1x128xf32>
    %c0_1 = arith.constant 0 : index
    %c0_2 = arith.constant 0 : index
    %1 = vector.load %arg4[%c0_1, %c0_2] : memref<1x384xf32, #tpu.memory_space<vmem>>, vector<1x384xf32>
    %c0_3 = arith.constant 0 : index
    %c0_4 = arith.constant 0 : index
    %2 = vector.load %arg5[%c0_3, %c0_4] : memref<128x128xf32, #tpu.memory_space<vmem>>, vector<128x128xf32>
    %c0_5 = arith.constant 0 : index
    %c0_6 = arith.constant 0 : index
    %3 = vector.load %arg6[%c0_5, %c0_6] : memref<1x128xf32, #tpu.memory_space<vmem>>, vector<1x128xf32>
    %c0_7 = arith.constant 0 : index
    %c0_8 = arith.constant 0 : index
    %4 = vector.load %arg7[%c0_7, %c0_8] : memref<1x128xf32, #tpu.memory_space<vmem>>, vector<1x128xf32>
    %c0_9 = arith.constant 0 : index
    %c0_10 = arith.constant 0 : index
    %5 = vector.load %arg8[%c0_9, %c0_10] : memref<1x128xf32, #tpu.memory_space<vmem>>, vector<1x128xf32>
    %c0_11 = arith.constant 0 : index
    %c0_12 = arith.constant 0 : index
    %6 = vector.load %arg10[%c0_11, %c0_12] : memref<1x2048xf32, #tpu.memory_space<vmem>>, vector<1x2048xf32>
    %c0_13 = arith.constant 0 : index
    %c0_14 = arith.constant 0 : index
    %7 = vector.load %arg12[%c0_13, %c0_14] : memref<1x128xf32, #tpu.memory_space<vmem>>, vector<1x128xf32>
    %c0_15 = arith.constant 0 : index
    %c0_16 = arith.constant 0 : index
    %8 = vector.load %arg13[%c0_15, %c0_16] : memref<1x128xf32, #tpu.memory_space<vmem>>, vector<1x128xf32>
    %c0_17 = arith.constant 0 : index
    %c0_18 = arith.constant 0 : index
    %9 = vector.load %arg14[%c0_17, %c0_18] : memref<1x128xf32, #tpu.memory_space<vmem>>, vector<1x128xf32>
    %c0_19 = arith.constant 0 : index
    %c0_20 = arith.constant 0 : index
    %10 = vector.load %arg16[%c0_19, %c0_20] : memref<1x128xf32, #tpu.memory_space<vmem>>, vector<1x128xf32>
    %c0_21 = arith.constant 0 : index
    %c0_22 = arith.constant 0 : index
    %11 = vector.load %arg0[%c0_21, %c0_22] : memref<16x128xf32, #tpu.memory_space<vmem>>, vector<16x128xf32>
    %c0_23 = arith.constant 0 : index
    %c0_24 = arith.constant 0 : index
    %12 = vector.load %arg1[%c0_23, %c0_24] : memref<128x128xf32, #tpu.memory_space<vmem>>, vector<128x128xf32>
    %cst = arith.constant dense<0.000000e+00> : vector<16x128xf32>
    %13 = tpu.matmul %11, %12, %cst {dimension_numbers = #tpu.dot_dimension_numbers<[1], [0], [0], [1], [0, 0, 1, 1], [], []>} : vector<16x128xf32>, vector<128x128xf32>, vector<16x128xf32> -> vector<16x128xf32>
    %14 = vector.broadcast %0 : vector<1x128xf32> to vector<16x128xf32>
    %15 = arith.addf %13, %14 : vector<16x128xf32>
    %c0_25 = arith.constant 0 : index
    %c0_26 = arith.constant 0 : index
    %16 = vector.load %arg3[%c0_25, %c0_26] : memref<128x384xf32, #tpu.memory_space<vmem>>, vector<128x384xf32>
    %cst_27 = arith.constant dense<0.000000e+00> : vector<16x384xf32>
    %17 = tpu.matmul %15, %16, %cst_27 {dimension_numbers = #tpu.dot_dimension_numbers<[1], [0], [0], [1], [0, 0, 1, 1], [], []>} : vector<16x128xf32>, vector<128x384xf32>, vector<16x384xf32> -> vector<16x384xf32>
    %18 = vector.broadcast %1 : vector<1x384xf32> to vector<16x384xf32>
    %19 = arith.addf %17, %18 : vector<16x384xf32>
    %20 = vector.extract_strided_slice %19 {offsets = [0, 0], sizes = [16, 128], strides = [1, 1]} : vector<16x384xf32> to vector<16x128xf32>
    %21 = vector.shape_cast %20 : vector<16x128xf32> to vector<2x8x128xf32>
    %22 = vector.extract_strided_slice %19 {offsets = [0, 128], sizes = [16, 128], strides = [1, 1]} : vector<16x384xf32> to vector<16x128xf32>
    %23 = vector.shape_cast %22 : vector<16x128xf32> to vector<2x8x128xf32>
    %24 = vector.extract_strided_slice %19 {offsets = [0, 256], sizes = [16, 128], strides = [1, 1]} : vector<16x384xf32> to vector<16x128xf32>
    %25 = vector.shape_cast %24 : vector<16x128xf32> to vector<2x8x128xf32>
    %cst_28 = arith.constant 0.000000e+00 : f32
    %26 = vector.broadcast %cst_28 : f32 to vector<16x128xf32>
    %27 = vector.extract_strided_slice %21 {offsets = [0, 0, 0], sizes = [2, 8, 32], strides = [1, 1, 1]} : vector<2x8x128xf32> to vector<2x8x32xf32>
    %28 = vector.extract_strided_slice %23 {offsets = [0, 0, 0], sizes = [2, 8, 32], strides = [1, 1, 1]} : vector<2x8x128xf32> to vector<2x8x32xf32>
    %29 = vector.extract_strided_slice %25 {offsets = [0, 0, 0], sizes = [2, 8, 32], strides = [1, 1, 1]} : vector<2x8x128xf32> to vector<2x8x32xf32>
    "tpu.trace_start"() <{level = 10 : i32, message = "bqd,bkd->bqk"}> : () -> ()
    %cst_29 = arith.constant dense<0.000000e+00> : vector<2x8x8xf32>
    %30 = tpu.matmul %27, %28, %cst_29 {dimension_numbers = #tpu.dot_dimension_numbers<[2], [2], [1], [1], [0, 0, 0, 1, 1, 1], [0], [0]>} : vector<2x8x32xf32>, vector<2x8x32xf32>, vector<2x8x8xf32> -> vector<2x8x8xf32>
    "tpu.trace_stop"() : () -> ()
    %cst_30 = arith.constant 0.176776692 : f32
    %31 = vector.broadcast %cst_30 : f32 to vector<2x8x8xf32>
    %32 = arith.mulf %30, %31 : vector<2x8x8xf32>
    %cst_31 = arith.constant dense<0xFF800000> : vector<2x8xf32>
    %33 = vector.multi_reduction <maximumf>, %32, %cst_31 [2] : vector<2x8x8xf32> to vector<2x8xf32>
    %34 = vector.shape_cast %33 : vector<2x8xf32> to vector<2x8x1xf32>
    %35 = vector.broadcast %34 : vector<2x8x1xf32> to vector<2x8x8xf32>
    %36 = arith.subf %32, %35 : vector<2x8x8xf32>
    %37 = math.exp %36 : vector<2x8x8xf32>
    %cst_32 = arith.constant dense<0.000000e+00> : vector<2x8xf32>
    %38 = vector.multi_reduction <add>, %37, %cst_32 [2] : vector<2x8x8xf32> to vector<2x8xf32>
    %39 = vector.shape_cast %38 : vector<2x8xf32> to vector<2x8x1xf32>
    %40 = tpu.reciprocal %39 {approx = true} : vector<2x8x1xf32> -> vector<2x8x1xf32>
    %41 = vector.broadcast %40 : vector<2x8x1xf32> to vector<2x8x8xf32>
    %42 = arith.mulf %37, %41 : vector<2x8x8xf32>
    "tpu.trace_start"() <{level = 10 : i32, message = "bqk,bkd->bqd"}> : () -> ()
    %cst_33 = arith.constant dense<0.000000e+00> : vector<2x8x32xf32>
    %43 = tpu.matmul %42, %29, %cst_33 {dimension_numbers = #tpu.dot_dimension_numbers<[2], [1], [1], [2], [0, 0, 0, 1, 1, 2], [0], [0]>} : vector<2x8x8xf32>, vector<2x8x32xf32>, vector<2x8x32xf32> -> vector<2x8x32xf32>
    "tpu.trace_stop"() : () -> ()
    %44 = vector.shape_cast %43 : vector<2x8x32xf32> to vector<16x32xf32>
    %45 = vector.extract_strided_slice %2 {offsets = [0, 0], sizes = [32, 128], strides = [1, 1]} : vector<128x128xf32> to vector<32x128xf32>
    %cst_34 = arith.constant dense<0.000000e+00> : vector<16x128xf32>
    %46 = tpu.matmul %44, %45, %cst_34 {dimension_numbers = #tpu.dot_dimension_numbers<[1], [0], [0], [1], [0, 0, 1, 1], [], []>} : vector<16x32xf32>, vector<32x128xf32>, vector<16x128xf32> -> vector<16x128xf32>
    %47 = arith.addf %26, %46 : vector<16x128xf32>
    %48 = vector.extract_strided_slice %21 {offsets = [0, 0, 32], sizes = [2, 8, 32], strides = [1, 1, 1]} : vector<2x8x128xf32> to vector<2x8x32xf32>
    %49 = vector.extract_strided_slice %23 {offsets = [0, 0, 32], sizes = [2, 8, 32], strides = [1, 1, 1]} : vector<2x8x128xf32> to vector<2x8x32xf32>
    %50 = vector.extract_strided_slice %25 {offsets = [0, 0, 32], sizes = [2, 8, 32], strides = [1, 1, 1]} : vector<2x8x128xf32> to vector<2x8x32xf32>
    "tpu.trace_start"() <{level = 10 : i32, message = "bqd,bkd->bqk"}> : () -> ()
    %cst_35 = arith.constant dense<0.000000e+00> : vector<2x8x8xf32>
    %51 = tpu.matmul %48, %49, %cst_35 {dimension_numbers = #tpu.dot_dimension_numbers<[2], [2], [1], [1], [0, 0, 0, 1, 1, 1], [0], [0]>} : vector<2x8x32xf32>, vector<2x8x32xf32>, vector<2x8x8xf32> -> vector<2x8x8xf32>
    "tpu.trace_stop"() : () -> ()
    %cst_36 = arith.constant 0.176776692 : f32
    %52 = vector.broadcast %cst_36 : f32 to vector<2x8x8xf32>
    %53 = arith.mulf %51, %52 : vector<2x8x8xf32>
    %cst_37 = arith.constant dense<0xFF800000> : vector<2x8xf32>
    %54 = vector.multi_reduction <maximumf>, %53, %cst_37 [2] : vector<2x8x8xf32> to vector<2x8xf32>
    %55 = vector.shape_cast %54 : vector<2x8xf32> to vector<2x8x1xf32>
    %56 = vector.broadcast %55 : vector<2x8x1xf32> to vector<2x8x8xf32>
    %57 = arith.subf %53, %56 : vector<2x8x8xf32>
    %58 = math.exp %57 : vector<2x8x8xf32>
    %cst_38 = arith.constant dense<0.000000e+00> : vector<2x8xf32>
    %59 = vector.multi_reduction <add>, %58, %cst_38 [2] : vector<2x8x8xf32> to vector<2x8xf32>
    %60 = vector.shape_cast %59 : vector<2x8xf32> to vector<2x8x1xf32>
    %61 = tpu.reciprocal %60 {approx = true} : vector<2x8x1xf32> -> vector<2x8x1xf32>
    %62 = vector.broadcast %61 : vector<2x8x1xf32> to vector<2x8x8xf32>
    %63 = arith.mulf %58, %62 : vector<2x8x8xf32>
    "tpu.trace_start"() <{level = 10 : i32, message = "bqk,bkd->bqd"}> : () -> ()
    %cst_39 = arith.constant dense<0.000000e+00> : vector<2x8x32xf32>
    %64 = tpu.matmul %63, %50, %cst_39 {dimension_numbers = #tpu.dot_dimension_numbers<[2], [1], [1], [2], [0, 0, 0, 1, 1, 2], [0], [0]>} : vector<2x8x8xf32>, vector<2x8x32xf32>, vector<2x8x32xf32> -> vector<2x8x32xf32>
    "tpu.trace_stop"() : () -> ()
    %65 = vector.shape_cast %64 : vector<2x8x32xf32> to vector<16x32xf32>
    %66 = vector.extract_strided_slice %2 {offsets = [32, 0], sizes = [32, 128], strides = [1, 1]} : vector<128x128xf32> to vector<32x128xf32>
    %cst_40 = arith.constant dense<0.000000e+00> : vector<16x128xf32>
    %67 = tpu.matmul %65, %66, %cst_40 {dimension_numbers = #tpu.dot_dimension_numbers<[1], [0], [0], [1], [0, 0, 1, 1], [], []>} : vector<16x32xf32>, vector<32x128xf32>, vector<16x128xf32> -> vector<16x128xf32>
    %68 = arith.addf %47, %67 : vector<16x128xf32>
    %69 = vector.extract_strided_slice %21 {offsets = [0, 0, 64], sizes = [2, 8, 32], strides = [1, 1, 1]} : vector<2x8x128xf32> to vector<2x8x32xf32>
    %70 = vector.extract_strided_slice %23 {offsets = [0, 0, 64], sizes = [2, 8, 32], strides = [1, 1, 1]} : vector<2x8x128xf32> to vector<2x8x32xf32>
    %71 = vector.extract_strided_slice %25 {offsets = [0, 0, 64], sizes = [2, 8, 32], strides = [1, 1, 1]} : vector<2x8x128xf32> to vector<2x8x32xf32>
    "tpu.trace_start"() <{level = 10 : i32, message = "bqd,bkd->bqk"}> : () -> ()
    %cst_41 = arith.constant dense<0.000000e+00> : vector<2x8x8xf32>
    %72 = tpu.matmul %69, %70, %cst_41 {dimension_numbers = #tpu.dot_dimension_numbers<[2], [2], [1], [1], [0, 0, 0, 1, 1, 1], [0], [0]>} : vector<2x8x32xf32>, vector<2x8x32xf32>, vector<2x8x8xf32> -> vector<2x8x8xf32>
    "tpu.trace_stop"() : () -> ()
    %cst_42 = arith.constant 0.176776692 : f32
    %73 = vector.broadcast %cst_42 : f32 to vector<2x8x8xf32>
    %74 = arith.mulf %72, %73 : vector<2x8x8xf32>
    %cst_43 = arith.constant dense<0xFF800000> : vector<2x8xf32>
    %75 = vector.multi_reduction <maximumf>, %74, %cst_43 [2] : vector<2x8x8xf32> to vector<2x8xf32>
    %76 = vector.shape_cast %75 : vector<2x8xf32> to vector<2x8x1xf32>
    %77 = vector.broadcast %76 : vector<2x8x1xf32> to vector<2x8x8xf32>
    %78 = arith.subf %74, %77 : vector<2x8x8xf32>
    %79 = math.exp %78 : vector<2x8x8xf32>
    %cst_44 = arith.constant dense<0.000000e+00> : vector<2x8xf32>
    %80 = vector.multi_reduction <add>, %79, %cst_44 [2] : vector<2x8x8xf32> to vector<2x8xf32>
    %81 = vector.shape_cast %80 : vector<2x8xf32> to vector<2x8x1xf32>
    %82 = tpu.reciprocal %81 {approx = true} : vector<2x8x1xf32> -> vector<2x8x1xf32>
    %83 = vector.broadcast %82 : vector<2x8x1xf32> to vector<2x8x8xf32>
    %84 = arith.mulf %79, %83 : vector<2x8x8xf32>
    "tpu.trace_start"() <{level = 10 : i32, message = "bqk,bkd->bqd"}> : () -> ()
    %cst_45 = arith.constant dense<0.000000e+00> : vector<2x8x32xf32>
    %85 = tpu.matmul %84, %71, %cst_45 {dimension_numbers = #tpu.dot_dimension_numbers<[2], [1], [1], [2], [0, 0, 0, 1, 1, 2], [0], [0]>} : vector<2x8x8xf32>, vector<2x8x32xf32>, vector<2x8x32xf32> -> vector<2x8x32xf32>
    "tpu.trace_stop"() : () -> ()
    %86 = vector.shape_cast %85 : vector<2x8x32xf32> to vector<16x32xf32>
    %87 = vector.extract_strided_slice %2 {offsets = [64, 0], sizes = [32, 128], strides = [1, 1]} : vector<128x128xf32> to vector<32x128xf32>
    %cst_46 = arith.constant dense<0.000000e+00> : vector<16x128xf32>
    %88 = tpu.matmul %86, %87, %cst_46 {dimension_numbers = #tpu.dot_dimension_numbers<[1], [0], [0], [1], [0, 0, 1, 1], [], []>} : vector<16x32xf32>, vector<32x128xf32>, vector<16x128xf32> -> vector<16x128xf32>
    %89 = arith.addf %68, %88 : vector<16x128xf32>
    %90 = vector.extract_strided_slice %21 {offsets = [0, 0, 96], sizes = [2, 8, 32], strides = [1, 1, 1]} : vector<2x8x128xf32> to vector<2x8x32xf32>
    %91 = vector.extract_strided_slice %23 {offsets = [0, 0, 96], sizes = [2, 8, 32], strides = [1, 1, 1]} : vector<2x8x128xf32> to vector<2x8x32xf32>
    %92 = vector.extract_strided_slice %25 {offsets = [0, 0, 96], sizes = [2, 8, 32], strides = [1, 1, 1]} : vector<2x8x128xf32> to vector<2x8x32xf32>
    "tpu.trace_start"() <{level = 10 : i32, message = "bqd,bkd->bqk"}> : () -> ()
    %cst_47 = arith.constant dense<0.000000e+00> : vector<2x8x8xf32>
    %93 = tpu.matmul %90, %91, %cst_47 {dimension_numbers = #tpu.dot_dimension_numbers<[2], [2], [1], [1], [0, 0, 0, 1, 1, 1], [0], [0]>} : vector<2x8x32xf32>, vector<2x8x32xf32>, vector<2x8x8xf32> -> vector<2x8x8xf32>
    "tpu.trace_stop"() : () -> ()
    %cst_48 = arith.constant 0.176776692 : f32
    %94 = vector.broadcast %cst_48 : f32 to vector<2x8x8xf32>
    %95 = arith.mulf %93, %94 : vector<2x8x8xf32>
    %cst_49 = arith.constant dense<0xFF800000> : vector<2x8xf32>
    %96 = vector.multi_reduction <maximumf>, %95, %cst_49 [2] : vector<2x8x8xf32> to vector<2x8xf32>
    %97 = vector.shape_cast %96 : vector<2x8xf32> to vector<2x8x1xf32>
    %98 = vector.broadcast %97 : vector<2x8x1xf32> to vector<2x8x8xf32>
    %99 = arith.subf %95, %98 : vector<2x8x8xf32>
    %100 = math.exp %99 : vector<2x8x8xf32>
    %cst_50 = arith.constant dense<0.000000e+00> : vector<2x8xf32>
    %101 = vector.multi_reduction <add>, %100, %cst_50 [2] : vector<2x8x8xf32> to vector<2x8xf32>
    %102 = vector.shape_cast %101 : vector<2x8xf32> to vector<2x8x1xf32>
    %103 = tpu.reciprocal %102 {approx = true} : vector<2x8x1xf32> -> vector<2x8x1xf32>
    %104 = vector.broadcast %103 : vector<2x8x1xf32> to vector<2x8x8xf32>
    %105 = arith.mulf %100, %104 : vector<2x8x8xf32>
    "tpu.trace_start"() <{level = 10 : i32, message = "bqk,bkd->bqd"}> : () -> ()
    %cst_51 = arith.constant dense<0.000000e+00> : vector<2x8x32xf32>
    %106 = tpu.matmul %105, %92, %cst_51 {dimension_numbers = #tpu.dot_dimension_numbers<[2], [1], [1], [2], [0, 0, 0, 1, 1, 2], [0], [0]>} : vector<2x8x8xf32>, vector<2x8x32xf32>, vector<2x8x32xf32> -> vector<2x8x32xf32>
    "tpu.trace_stop"() : () -> ()
    %107 = vector.shape_cast %106 : vector<2x8x32xf32> to vector<16x32xf32>
    %108 = vector.extract_strided_slice %2 {offsets = [96, 0], sizes = [32, 128], strides = [1, 1]} : vector<128x128xf32> to vector<32x128xf32>
    %cst_52 = arith.constant dense<0.000000e+00> : vector<16x128xf32>
    %109 = tpu.matmul %107, %108, %cst_52 {dimension_numbers = #tpu.dot_dimension_numbers<[1], [0], [0], [1], [0, 0, 1, 1], [], []>} : vector<16x32xf32>, vector<32x128xf32>, vector<16x128xf32> -> vector<16x128xf32>
    %110 = arith.addf %89, %109 : vector<16x128xf32>
    %111 = vector.broadcast %3 : vector<1x128xf32> to vector<16x128xf32>
    %112 = arith.addf %110, %111 : vector<16x128xf32>
    %113 = arith.addf %15, %112 : vector<16x128xf32>
    %cst_53 = arith.constant dense<0.000000e+00> : vector<16xf32>
    %114 = vector.multi_reduction <add>, %113, %cst_53 [1] : vector<16x128xf32> to vector<16xf32>
    %115 = vector.shape_cast %114 : vector<16xf32> to vector<16x1xf32>
    %cst_54 = arith.constant 1.280000e+02 : f32
    %116 = vector.broadcast %cst_54 : f32 to vector<16x1xf32>
    %117 = arith.divf %115, %116 : vector<16x1xf32>
    %118 = vector.broadcast %117 : vector<16x1xf32> to vector<16x128xf32>
    %119 = arith.subf %113, %118 : vector<16x128xf32>
    %120 = arith.mulf %119, %119 : vector<16x128xf32>
    %cst_55 = arith.constant dense<0.000000e+00> : vector<16xf32>
    %121 = vector.multi_reduction <add>, %120, %cst_55 [1] : vector<16x128xf32> to vector<16xf32>
    %122 = vector.shape_cast %121 : vector<16xf32> to vector<16x1xf32>
    %cst_56 = arith.constant 1.280000e+02 : f32
    %123 = vector.broadcast %cst_56 : f32 to vector<16x1xf32>
    %124 = arith.divf %122, %123 : vector<16x1xf32>
    %125 = vector.broadcast %117 : vector<16x1xf32> to vector<16x128xf32>
    %126 = arith.subf %113, %125 : vector<16x128xf32>
    %cst_57 = arith.constant 9.99999974E-6 : f32
    %127 = vector.broadcast %cst_57 : f32 to vector<16x1xf32>
    %128 = arith.addf %124, %127 : vector<16x1xf32>
    %129 = math.rsqrt %128 : vector<16x1xf32>
    %130 = vector.broadcast %129 : vector<16x1xf32> to vector<16x128xf32>
    %131 = arith.mulf %126, %130 : vector<16x128xf32>
    %132 = vector.broadcast %4 : vector<1x128xf32> to vector<16x128xf32>
    %133 = arith.mulf %131, %132 : vector<16x128xf32>
    %134 = vector.broadcast %5 : vector<1x128xf32> to vector<16x128xf32>
    %135 = arith.addf %133, %134 : vector<16x128xf32>
    %136 = arith.truncf %135 : vector<16x128xf32> to vector<16x128xbf16>
    %c0_58 = arith.constant 0 : index
    %c0_59 = arith.constant 0 : index
    %137 = vector.load %arg9[%c0_58, %c0_59] : memref<128x2048xbf16, #tpu.memory_space<vmem>>, vector<128x2048xbf16>
    %cst_60 = arith.constant dense<0.000000e+00> : vector<16x2048xf32>
    %138 = tpu.matmul %136, %137, %cst_60 {dimension_numbers = #tpu.dot_dimension_numbers<[1], [0], [0], [1], [0, 0, 1, 1], [], []>} : vector<16x128xbf16>, vector<128x2048xbf16>, vector<16x2048xf32> -> vector<16x2048xf32>
    %139 = vector.broadcast %6 : vector<1x2048xf32> to vector<16x2048xf32>
    %140 = arith.addf %138, %139 : vector<16x2048xf32>
    %cst_61 = arith.constant 0.000000e+00 : f32
    %141 = vector.broadcast %cst_61 : f32 to vector<16x2048xf32>
    %142 = arith.maximumf %140, %141 : vector<16x2048xf32>
    %143 = arith.truncf %142 : vector<16x2048xf32> to vector<16x2048xbf16>
    %c0_62 = arith.constant 0 : index
    %c0_63 = arith.constant 0 : index
    %144 = vector.load %arg11[%c0_62, %c0_63] : memref<2048x128xbf16, #tpu.memory_space<vmem>>, vector<2048x128xbf16>
    %cst_64 = arith.constant dense<0.000000e+00> : vector<16x128xf32>
    %145 = tpu.matmul %143, %144, %cst_64 {dimension_numbers = #tpu.dot_dimension_numbers<[1], [0], [0], [1], [0, 0, 1, 1], [], []>} : vector<16x2048xbf16>, vector<2048x128xbf16>, vector<16x128xf32> -> vector<16x128xf32>
    %146 = vector.broadcast %7 : vector<1x128xf32> to vector<16x128xf32>
    %147 = arith.addf %145, %146 : vector<16x128xf32>
    %148 = arith.addf %135, %147 : vector<16x128xf32>
    %cst_65 = arith.constant dense<0.000000e+00> : vector<16xf32>
    %149 = vector.multi_reduction <add>, %148, %cst_65 [1] : vector<16x128xf32> to vector<16xf32>
    %150 = vector.shape_cast %149 : vector<16xf32> to vector<16x1xf32>
    %cst_66 = arith.constant 1.280000e+02 : f32
    %151 = vector.broadcast %cst_66 : f32 to vector<16x1xf32>
    %152 = arith.divf %150, %151 : vector<16x1xf32>
    %153 = vector.broadcast %152 : vector<16x1xf32> to vector<16x128xf32>
    %154 = arith.subf %148, %153 : vector<16x128xf32>
    %155 = arith.mulf %154, %154 : vector<16x128xf32>
    %cst_67 = arith.constant dense<0.000000e+00> : vector<16xf32>
    %156 = vector.multi_reduction <add>, %155, %cst_67 [1] : vector<16x128xf32> to vector<16xf32>
    %157 = vector.shape_cast %156 : vector<16xf32> to vector<16x1xf32>
    %cst_68 = arith.constant 1.280000e+02 : f32
    %158 = vector.broadcast %cst_68 : f32 to vector<16x1xf32>
    %159 = arith.divf %157, %158 : vector<16x1xf32>
    %160 = vector.broadcast %152 : vector<16x1xf32> to vector<16x128xf32>
    %161 = arith.subf %148, %160 : vector<16x128xf32>
    %cst_69 = arith.constant 9.99999974E-6 : f32
    %162 = vector.broadcast %cst_69 : f32 to vector<16x1xf32>
    %163 = arith.addf %159, %162 : vector<16x1xf32>
    %164 = math.rsqrt %163 : vector<16x1xf32>
    %165 = vector.broadcast %164 : vector<16x1xf32> to vector<16x128xf32>
    %166 = arith.mulf %161, %165 : vector<16x128xf32>
    %167 = vector.broadcast %8 : vector<1x128xf32> to vector<16x128xf32>
    %168 = arith.mulf %166, %167 : vector<16x128xf32>
    %169 = vector.broadcast %9 : vector<1x128xf32> to vector<16x128xf32>
    %170 = arith.addf %168, %169 : vector<16x128xf32>
    %c0_70 = arith.constant 0 : index
    %c0_71 = arith.constant 0 : index
    %171 = vector.load %arg15[%c0_70, %c0_71] : memref<128x128xf32, #tpu.memory_space<vmem>>, vector<128x128xf32>
    %cst_72 = arith.constant dense<0.000000e+00> : vector<16x128xf32>
    %172 = tpu.matmul %170, %171, %cst_72 {dimension_numbers = #tpu.dot_dimension_numbers<[1], [0], [0], [1], [0, 0, 1, 1], [], []>} : vector<16x128xf32>, vector<128x128xf32>, vector<16x128xf32> -> vector<16x128xf32>
    %173 = vector.broadcast %10 : vector<1x128xf32> to vector<16x128xf32>
    %174 = arith.addf %172, %173 : vector<16x128xf32>
    %c0_73 = arith.constant 0 : index
    %c0_74 = arith.constant 0 : index
    %175 = vector.load %arg17[%c0_73, %c0_74] : memref<16x128xf32, #tpu.memory_space<vmem>>, vector<16x128xf32>
    tpu.vector_store %arg17[%c0_73, %c0_74], %174 {strides = array<i32>} : memref<16x128xf32, #tpu.memory_space<vmem>>, vector<16x128xf32>,
    return
  }
}

</mosaic_0001>

<bundles_post_ra>
// kernel: tpu_custom_call.1
= control target key start
LH: loop header
LB: loop body
LE: loop exit
PB: predicated region body
PF: predicated region fallthrough
CT: control target
= control target key end

     0   :  { %s5567_s0 = inlined_call_operand.hbm [shape: f32[16,128], index: 0, kind: input, shape index: {}]   ;;  %s5568_s1 = inlined_call_operand.hbm [shape: f32[128,128], index: 1, kind: input, shape index: {}]   ;;  %s5569_s2 = inlined_call_operand.hbm [shape: f32[1,128], index: 2, kind: input, shape index: {}]   ;;  %s5570_s3 = inlined_call_operand.hbm [shape: f32[128,384], index: 3, kind: input, shape index: {}]   ;;  %s5571_s4 = inlined_call_operand.vmem [shape: f32[1,384], index: 4, kind: input, shape index: {}]   ;;  %s5572_s5 = inlined_call_operand.hbm [shape: f32[128,128], index: 5, kind: input, shape index: {}]   ;;  %s5573_s6 = inlined_call_operand.vmem [shape: f32[1,128], index: 6, kind: input, shape index: {}]   ;;  %s5574_s7 = inlined_call_operand.vmem [shape: f32[1,128], index: 7, kind: input, shape index: {}]   ;;  %s5575_s8 = inlined_call_operand.vmem [shape: f32[1,128], index: 8, kind: input, shape index: {}]   ;;  %s5576_s9 = inlined_call_operand.hbm [shape: bf16[128,2048], index: 9, kind: input, shape index: {}]   ;;  %s5577_s10 = inlined_call_operand.hbm [shape: f32[1,2048], index: 10, kind: input, shape index: {}]   ;;  %s5578_s11 = inlined_call_operand.hbm [shape: bf16[2048,128], index: 11, kind: input, shape index: {}]   ;;  %s5579_s12 = inlined_call_operand.vmem [shape: f32[1,128], index: 12, kind: input, shape index: {}]   ;;  %s5580_s13 = inlined_call_operand.vmem [shape: f32[1,128], index: 13, kind: input, shape index: {}]   ;;  %s5581_s14 = inlined_call_operand.vmem [shape: f32[1,128], index: 14, kind: input, shape index: {}]   ;;  %s5582_s15 = inlined_call_operand.hbm [shape: f32[128,128], index: 15, kind: input, shape index: {}]   ;;  %s5583_s16 = inlined_call_operand.vmem [shape: f32[1,128], index: 16, kind: input, shape index: {}]   ;;  %s5584_s17 = inlined_call_operand.hbm [shape: f32[16,128], index: 17, kind: output, shape index: {}]  }
   0x1   :  { %5587 = sst [smem:[#allocation24_spill]] %s5567_s0 }
   0x2   :  { %5588 = sst [smem:[#allocation25_spill]] %s5568_s1 }
   0x3   :  { %5589 = sst [smem:[#allocation26_spill]] %s5584_s17 }
   0x4   :  { %22 = vsyncpa [#allocation3], 0 }
   0x5   :  { %23 = vsyncpa [#allocation6], 0 }
   0x6   :  { %24 = vsyncpa [#allocation9], 0 }
   0x7   :  { %25 = vsyncpa [#allocation12], 0 }
   0x8   :  { %26 = vsyncpa [#allocation15], 0 }
   0x9   :  { %27 = vsyncpa [#allocation4], 0  ;;  %s5590_s26 = sld [smem:[#allocation25_spill]]  ;;  %s5173_s28 = smov [#allocation5]  }
   0xa   :  { %s47_s29 = sshll.u32 %s5173_s28, 4  ;;  %s69_s18 = sshll.u32 %s5570_s3, 4  ;;  %s48_s29 = int_to_ptr.vmem [resolvable:$true] %s47_s29  ;;  %s70_s18 = int_to_ptr.hbm [resolvable:$true] %s69_s18 }
   0xb   :  { %s5585_s19 = smov 128   ;;  %s5175_s1 = smov 8  }
   0xc   :  { %s5176_s20 = smov [#allocation8]   ;;  %s5177_s22 = smov 384  }
   0xd   :  { %s71_s21 = sshll.u32 %s5176_s20, 4  ;;  %s5178_s23 = smov 24   ;;  %s72_s21 = int_to_ptr.vmem [resolvable:$true] %s71_s21 }
   0xe   :  { %77 = dma.hbm_to_vmem [thread:$0]  %s70_s18, 6144, %s72_s21, [#allocation9], %s5177_s22, %s5177_s22, %s5178_s23  }
   0xf   :  { %s45_s27 = sshll.u32 %s5590_s26, 4  ;;  %s103_s26 = sshll.u32 %s5576_s9, 4  ;;  %s46_s27 = int_to_ptr.hbm [resolvable:$true] %s45_s27  ;;  %s104_s26 = int_to_ptr.hbm [resolvable:$true] %s103_s26 }
  0x10   :  { %53 = dma.hbm_to_vmem [thread:$0]  %s46_s27, 2048, %s48_s29, [#allocation6], %s5585_s19, %s5585_s19, %s5175_s1  }
  0x11   :  { %s5179_s28 = smov [#allocation11]   ;;  %s127_s17 = sshll.u32 %s5578_s11, 4  ;;  %s128_s17 = int_to_ptr.hbm [resolvable:$true] %s127_s17 }
  0x12   :  { %s105_s3 = sshll.u32 %s5179_s28, 4  ;;  %s5180_s27 = smov 1024   ;;  %s106_s3 = int_to_ptr.vmem [resolvable:$true] %s105_s3 }
  0x13   :  { %s5181_s29 = smov 64   ;;  %s5182_s20 = smov [#allocation14]  }
  0x14   :  { %111 = dma.hbm_to_vmem [thread:$0]  %s104_s26, 16384, %s106_s3, [#allocation12], %s5180_s27, %s5180_s27, %s5181_s29  }
  0x15   :  { %s129_s19 = sshll.u32 %s5182_s20, 4  ;;  %s5591_s22 = sld [smem:[#allocation24_spill]]  ;;  %s130_s19 = int_to_ptr.vmem [resolvable:$true] %s129_s19 }
  0x16   :  { %s5183_s23 = smov 4   ;;  %s5184_s24 = smov [#allocation2]  }
  0x17   :  { %135 = dma.hbm_to_vmem [thread:$0]  %s128_s17, 16384, %s130_s19, [#allocation15], %s5181_s29, %s5181_s29, %s5183_s23  }
  0x18   :  { %s34_s25 = sshll.u32 %s5184_s24, 4  ;;  %s59_s0 = sshll.u32 %s5569_s2, 4  ;;  %s35_s25 = int_to_ptr.vmem [resolvable:$true] %s34_s25  ;;  %s60_s0 = int_to_ptr.hbm [resolvable:$true] %s59_s0 }
  0x19   :  { %s5592_s26 = smov 128   ;;  %s84_s27 = sshll.u32 %s5572_s5, 4  ;;  %s85_s27 = int_to_ptr.hbm [resolvable:$true] %s84_s27 }
  0x1a   :  { %s5185_s20 = smov [#allocation7]   ;;  %s5186_s17 = smov [#allocation10]  }
  0x1b   :  { %s32_s9 = sshll.u32 %s5591_s22, 4  ;;  %s61_s18 = sshll.u32 %s5185_s20, 4  ;;  %s33_s9 = int_to_ptr.hbm [resolvable:$true] %s32_s9  ;;  %s62_s18 = int_to_ptr.vmem [resolvable:$true] %s61_s18 }
  0x1c   :  { %40 = dma.hbm_to_vmem [thread:$0]  %s33_s9, 256, %s35_s25, [#allocation3], %s5592_s26, %s5592_s26, %s5175_s1  }
  0x1d   :  { %64 = dma.hbm_to_vmem [thread:$0]  %s60_s0, 16, %s62_s18, [#allocation6]  }
  0x1e   :  { %s86_s19 = sshll.u32 %s5186_s17, 4  ;;  %s117_s2 = sshll.u32 %s5577_s10, 4  ;;  %s87_s19 = int_to_ptr.vmem [resolvable:$true] %s86_s19  ;;  %s118_s2 = int_to_ptr.hbm [resolvable:$true] %s117_s2 }
  0x1f   :  { %92 = dma.hbm_to_vmem [thread:$0]  %s85_s27, 2048, %s87_s19, [#allocation9], %s5592_s26, %s5592_s26, %s5175_s1  }
  0x20   :  { %s146_s5 = sshll.u32 %s5582_s15, 4  ;;  %s5187_s24 = smov [#allocation13]   ;;  %s147_s5 = int_to_ptr.hbm [resolvable:$true] %s146_s5 }
  0x21   :  { %s119_s25 = sshll.u32 %s5187_s24, 4  ;;  %s5188_s11 = smov [#allocation16]   ;;  %s120_s25 = int_to_ptr.vmem [resolvable:$true] %s119_s25 }
  0x22   :  { %122 = dma.hbm_to_vmem [thread:$0]  %s118_s2, 256, %s120_s25, [#allocation12]  }
  0x23   :  { %s148_s28 = sshll.u32 %s5188_s11, 4  ;;  %s149_s28 = int_to_ptr.vmem [resolvable:$true] %s148_s28 }
  0x24   :  { %154 = dma.hbm_to_vmem [thread:$0]  %s147_s5, 2048, %s149_s28, [#allocation15], %s5592_s26, %s5592_s26, %s5175_s1  }
  0x25   :  { %5161 = dma.done.wait [#allocation3], 256  }
  0x26   :  { %5162 = vsyncadd [#allocation3], 4294967040 }
  0x27   :  { %5163 = dma.done.wait [#allocation6], 2064  }
  0x28   :  { %5164 = vsyncadd [#allocation6], 4294965232 }
  0x29   :  { %5165 = dma.done.wait [#allocation9], 8192  }
  0x2a   :  { %5166 = vsyncadd [#allocation9], 4294959104 }
  0x2b   :  { %5167 = dma.done.wait [#allocation12], 16640  }
  0x2c   :  { %5168 = vsyncadd [#allocation12], 4294950656 }
  0x2d   :  { %5169 = dma.done.wait [#allocation15], 18432  }
  0x2e   :  { %5170 = vsyncadd [#allocation15], 4294948864  ;;  %v237_v0 = vld [vmem:[#allocation5 + $0x78] sm:$0xff]  ;;  %v236_v1 = vld [vmem:[#allocation5 + $0x70] sm:$0xff]  ;;  %vm388_vm0 = vcmask 261120   ;;  %s5189_s0 = smov 96  }
  0x2f   :  { %241 = vmatpush.msra.mxu0 %v237_v0  ;;  %v235_v2 = vld [vmem:[#allocation5 + $0x68] sm:$0xff]  ;;  %v234_v3 = vld [vmem:[#allocation5 + $0x60] sm:$0xff]  ;;  %v233_v4 = vld [vmem:[#allocation5 + $0x58] sm:$0xff]  ;;  %vm443_vm1 = vcmask 64512   ;;  %s5593_s23 = sld [smem:[#allocation26_spill]] }
  0x30   :  { %v232_v5 = vld [vmem:[#allocation5 + $0x50] sm:$0xff]  ;;  %v311_v8 = vld [vmem:[#allocation8 + $0x178] sm:$0xff]  ;;  %v308_v11 = vld [vmem:[#allocation8 + $0x160] sm:$0xff] }
  0x31   :  { %242 = vmatpush.msra.mxu0 %v236_v1  ;;  %v309_v6 = vld [vmem:[#allocation8 + $0x168] sm:$0xff]  ;;  %v310_v7 = vld [vmem:[#allocation8 + $0x170] sm:$0xff]  ;;  %v307_v10 = vld [vmem:[#allocation8 + $0x158] sm:$0xff]  ;;  %365 = vmatpush.msra.mxu3 %v311_v8 }
  0x32   :  { %319 = vmatpush.msra.mxu1 %v309_v6  ;;  %v306_v9 = vld [vmem:[#allocation8 + $0x150] sm:$0xff]  ;;  %v231_v12 = vld [vmem:[#allocation5 + $0x48] sm:$0xff]  ;;  %342 = vmatpush.msra.mxu2 %v310_v7  ;;  %v303_v13 = vld [vmem:[#allocation8 + $0x138] sm:$0xff] }
  0x33   :  { %243 = vmatpush.msra.mxu0 %v235_v2  ;;  %v304_v14 = vld [vmem:[#allocation8 + $0x140] sm:$0xff]  ;;  %v305_v15 = vld [vmem:[#allocation8 + $0x148] sm:$0xff]  ;;  %366 = vmatpush.msra.mxu3 %v308_v11  ;;  %v302_v19 = vld [vmem:[#allocation8 + $0x130] sm:$0xff] }
  0x34   :  { %320 = vmatpush.msra.mxu1 %v306_v9  ;;  %v230_v16 = vld [vmem:[#allocation5 + $0x40] sm:$0xff]  ;;  %343 = vmatpush.msra.mxu2 %v307_v10  ;;  %v301_v18 = vld [vmem:[#allocation8 + $0x128] sm:$0xff]  ;;  %v229_v20 = vld [vmem:[#allocation5 + $0x38] sm:$0xff] }
  0x35   :  { %244 = vmatpush.msra.mxu0 %v234_v3  ;;  %v300_v17 = vld [vmem:[#allocation8 + $0x120] sm:$0xff]  ;;  %367 = vmatpush.msra.mxu3 %v305_v15  ;;  %v297_v21 = vld [vmem:[#allocation8 + $0x108] sm:$0xff]  ;;  %v298_v22 = vld [vmem:[#allocation8 + $0x110] sm:$0xff]  ;;  %s3522_s5 = sshll.u32 %s5593_s23, 4  ;;  %s3523_s5 = int_to_ptr.hbm [resolvable:$true] %s3522_s5 }
  0x36   :  { %321 = vmatpush.msra.mxu1 %v303_v13  ;;  %344 = vmatpush.msra.mxu2 %v304_v14  ;;  %v299_v23 = vld [vmem:[#allocation8 + $0x118] sm:$0xff]  ;;  %v228_v24 = vld [vmem:[#allocation5 + $0x30] sm:$0xff]  ;;  %v296_v27 = vld [vmem:[#allocation8 + $0x100] sm:$0xff] }
  0x37   :  { %245 = vmatpush.msra.mxu0 %v233_v4  ;;  %368 = vmatpush.msra.mxu3 %v302_v19  ;;  %v294_v25 = vld [vmem:[#allocation8 + $0xf0] sm:$0xff]  ;;  %v295_v26 = vld [vmem:[#allocation8 + $0xf8] sm:$0xff]  ;;  %v227_v28 = vld [vmem:[#allocation5 + $0x28] sm:$0xff] }
  0x38   :  { %322 = vmatpush.msra.mxu1 %v300_v17  ;;  %345 = vmatpush.msra.mxu2 %v301_v18  ;;  %v291_v29 = vld [vmem:[#allocation8 + $0xd8] sm:$0xff]  ;;  %v292_v30 = vld [vmem:[#allocation8 + $0xe0] sm:$0xff]  ;;  %v293_v31 = vld [vmem:[#allocation8 + $0xe8] sm:$0xff] }
  0x39   :  { %246 = vmatpush.msra.mxu0 %v232_v5  ;;  %369 = vmatpush.msra.mxu3 %v299_v23  ;;  %v226_v32 = vld [vmem:[#allocation5 + $0x20] sm:$0xff]  ;;  %v225_v34 = vld [vmem:[#allocation5 + $0x18] sm:$0xff]  ;;  %v289_v35 = vld [vmem:[#allocation8 + $0xc8] sm:$0xff] }
  0x3a   :  { %323 = vmatpush.msra.mxu1 %v297_v21  ;;  %346 = vmatpush.msra.mxu2 %v298_v22  ;;  %v288_v33 = vld [vmem:[#allocation8 + $0xc0] sm:$0xff]  ;;  %v290_v36 = vld [vmem:[#allocation8 + $0xd0] sm:$0xff]  ;;  %v285_v37 = vld [vmem:[#allocation8 + $0xa8] sm:$0xff] }
  0x3b   :  { %247 = vmatpush.msra.mxu0 %v231_v12  ;;  %370 = vmatpush.msra.mxu3 %v296_v27  ;;  %v286_v38 = vld [vmem:[#allocation8 + $0xb0] sm:$0xff]  ;;  %v287_v39 = vld [vmem:[#allocation8 + $0xb8] sm:$0xff]  ;;  %v284_v43 = vld [vmem:[#allocation8 + $0xa0] sm:$0xff] }
  0x3c   :  { %324 = vmatpush.msra.mxu1 %v294_v25  ;;  %347 = vmatpush.msra.mxu2 %v295_v26  ;;  %v224_v40 = vld [vmem:[#allocation5 + $0x10] sm:$0xff]  ;;  %v283_v42 = vld [vmem:[#allocation8 + $0x98] sm:$0xff]  ;;  %v223_v44 = vld [vmem:[#allocation5 + $0x8] sm:$0xff] }
  0x3d   :  { %248 = vmatpush.msra.mxu0 %v230_v16  ;;  %371 = vmatpush.msra.mxu3 %v293_v31  ;;  %v282_v41 = vld [vmem:[#allocation8 + $0x90] sm:$0xff]  ;;  %v279_v45 = vld [vmem:[#allocation8 + $0x78] sm:$0xff]  ;;  %v280_v46 = vld [vmem:[#allocation8 + $0x80] sm:$0xff] }
  0x3e   :  { %325 = vmatpush.msra.mxu1 %v291_v29  ;;  %348 = vmatpush.msra.mxu2 %v292_v30  ;;  %v281_v47 = vld [vmem:[#allocation8 + $0x88] sm:$0xff]  ;;  %v222_v48 = vld [vmem:[#allocation5] sm:$0xff]  ;;  %v278_v52 = vld [vmem:[#allocation8 + $0x70] sm:$0xff] }
  0x3f   :  { %249 = vmatpush.msra.mxu0 %v229_v20  ;;  %372 = vmatpush.msra.mxu3 %v290_v36  ;;  %v276_v49 = vld [vmem:[#allocation8 + $0x60] sm:$0xff]  ;;  %v220_v50 = vld [vmem:[#allocation2] sm:$0xff]  ;;  %v275_v55 = vld [vmem:[#allocation8 + $0x58] sm:$0xff] }
  0x40   :  { %326 = vmatpush.msra.mxu1 %v288_v33  ;;  %349 = vmatpush.msra.mxu2 %v289_v35  ;;  %v277_v51 = vld [vmem:[#allocation8 + $0x68] sm:$0xff]  ;;  %v274_v54 = vld [vmem:[#allocation8 + $0x50] sm:$0xff]  ;;  %v271_v57 = vld [vmem:[#allocation8 + $0x38] sm:$0xff] }
  0x41   :  { %250 = vmatpush.msra.mxu0 %v228_v24  ;;  %373 = vmatpush.msra.mxu3 %v287_v39  ;;  %v273_v53 = vld [vmem:[#allocation8 + $0x48] sm:$0xff]  ;;  %v270_v56 = vld [vmem:[#allocation8 + $0x30] sm:$0xff]  ;;  %v272_v58 = vld [vmem:[#allocation8 + $0x40] sm:$0xff] }
  0x42   :  { %327 = vmatpush.msra.mxu1 %v285_v37  ;;  %350 = vmatpush.msra.mxu2 %v286_v38  ;;  %v221_v59 = vld [vmem:[#allocation2 + $0x8] sm:$0xff]  ;;  %v268_v61 = vld [vmem:[#allocation8 + $0x20] sm:$0xff]  ;;  %v269_v62 = vld [vmem:[#allocation8 + $0x28] sm:$0xff] }
  0x43   :  { %251 = vmatpush.msra.mxu0 %v227_v28  ;;  %374 = vmatpush.msra.mxu3 %v284_v43  ;;  %v267_v60 = vld [vmem:[#allocation8 + $0x18] sm:$0xff]  ;;  %v264_v63 = vld [vmem:[#allocation8] sm:$0xff]  ;;  %v265_v0 = vld [vmem:[#allocation8 + $0x8] sm:$0xff] }
  0x44   :  { %328 = vmatpush.msra.mxu1 %v282_v41  ;;  %351 = vmatpush.msra.mxu2 %v283_v42  ;;  %v266_v1 = vld [vmem:[#allocation8 + $0x10] sm:$0xff]  ;;  %v4871_v2 = vld [vmem:[#allocation7] ss:$0 sm:$0xff] }
  0x45   :  { %252 = vmatpush.msra.mxu0 %v226_v32  ;;  %375 = vmatpush.msra.mxu3 %v281_v47  ;;  %v194_v7 = vld [vmem:[%s5571_s4] sm:$0x7]  ;;  %s5190_s4 = smov 32  }
  0x46   :  { %329 = vmatpush.msra.mxu1 %v279_v45  ;;  %352 = vmatpush.msra.mxu2 %v280_v46  ;;  %v314_v8 = vperm.slane %v194_v7, 1  ;;  %v315_v9 = vperm.slane %v194_v7, 2  ;;  %v313_v10 = vperm.slane %v194_v7, 0 }
  0x47   :  { %253 = vmatpush.msra.mxu0 %v225_v34  ;;  %376 = vmatpush.msra.mxu3 %v278_v52 }
  0x48   :  { %330 = vmatpush.msra.mxu1 %v276_v49  ;;  %353 = vmatpush.msra.mxu2 %v277_v51 }
  0x49   :  { %254 = vmatpush.msra.mxu0 %v224_v40  ;;  %377 = vmatpush.msra.mxu3 %v275_v55 }
  0x4a   :  { %331 = vmatpush.msra.mxu1 %v273_v53  ;;  %354 = vmatpush.msra.mxu2 %v274_v54 }
  0x4b   :  { %255 = vmatpush.msra.mxu0 %v223_v44  ;;  %378 = vmatpush.msra.mxu3 %v272_v58 }
  0x4c   :  { %332 = vmatpush.msra.mxu1 %v270_v56  ;;  %355 = vmatpush.msra.mxu2 %v271_v57 }
  0x4d   :  { %256 = vmatpush.msra.mxu0 %v222_v48  ;;  %379 = vmatpush.msra.mxu3 %v269_v62 }
  0x4e   :  { %257 = vmatmul.f32.vlgmr.msra.gmra.mxu0 %v220_v50  ;;  %333 = vmatpush.msra.mxu1 %v267_v60 }
  0x4f   :  { %356 = vmatpush.msra.mxu2 %v268_v61  ;;  %380 = vmatpush.msra.mxu3 %v266_v1  ;;  %v198_v1 = vld [vmem:[#allocation10 + $0x18] sm:$0xff] }
  0x50   :  { %334 = vmatpush.msra.mxu1 %v264_v63 }
  0x51   :  { %357 = vmatpush.msra.mxu2 %v265_v0 }
  0x56   :  { %260 = vmatmul.f32.gmra.mxu0 %v221_v59 }
  0xcb   :  { %v258_v3 = vpop.f32.mrf.mxu0 }
  0xcc   :  { %v5325_v4 = vadd.f32 %v4871_v2, %v258_v3  ;;  %v196_v3 = vld [vmem:[#allocation10 + $0x8] sm:$0xff] }
  0xce   :  { %335 = vmatmul.f32.vlgmr.msra.gmra.mxu1 %v5325_v4  ;;  %358 = vmatmul.f32.vlgmr.msra.gmra.mxu2 %v5325_v4 }
  0xcf   :  { %381 = vmatmul.f32.vlgmr.msra.gmra.mxu3 %v5325_v4 }
  0xd3   :  { %v261_v5 = vpop.f32.mrf.mxu0 }
  0xd4   :  { %v5330_v6 = vadd.f32 %v4871_v2, %v261_v5  ;;  %v197_v2 = vld [vmem:[#allocation10 + $0x10] sm:$0xff]  ;;  %v195_v5 = vld [vmem:[#allocation10] sm:$0xff] }
  0xd6   :  { %361 = vmatmul.f32.gmra.mxu2 %v5330_v6  ;;  %338 = vmatmul.f32.gmra.mxu1 %v5330_v6 }
  0xd7   :  { %384 = vmatmul.f32.gmra.mxu3 %v5330_v6 }
 0x14b   :  { %v336_v12 = vpop.f32.mrf.mxu1 }
 0x14c   :  { %v5346_v16 = vadd.f32 %v336_v12, %v313_v10 }
 0x151   :  { %v359_v11 = vpop.f32.mrf.mxu2 }
 0x152   :  { %v5338_v13 = vadd.f32 %v359_v11, %v314_v8  ;;  %v382_v14 = vpop.f32.mrf.mxu3 }
 0x153   :  { %v5340_v15 = vadd.f32 %v382_v14, %v315_v9  ;;  %v339_v19 = vpop.f32.mrf.mxu1 }
 0x154   :  { %514 = vrot.lane.b32.xlu0 %v5338_v13, %s5189_s0  ;;  %3539 = vmatpush.xpose.msk.msrb.mxu0 %vm388_vm0, %v5338_v13  ;;  %v5359_v20 = vadd.f32 %v339_v19, %v313_v10 }
 0x155   :  { %484 = vmatpush.msrb.mxu2 %v5340_v15 }
 0x157   :  { %3540 = vmatmul.msk.f32.vlgmr.msrb.gmra.mxu0 %vm388_vm0, %v5346_v16 }
 0x159   :  { %v362_v17 = vpop.f32.mrf.mxu2 }
 0x15a   :  { %v5351_v18 = vadd.f32 %v362_v17, %v314_v8  ;;  %v385_v21 = vpop.f32.mrf.mxu3 }
 0x15b   :  { %v5365_v22 = vadd.f32 %v385_v21, %v315_v9 }
 0x15c   :  { %512 = vrot.lane.b32.xlu0 %v5346_v16, %s5189_s0  ;;  %542 = vrot.lane.b32.xlu1 %v5351_v18, %s5189_s0 }
 0x15d   :  { %3541 = vmatpush.xpose.msk.msrb.mxu1 %vm388_vm0, %v5351_v18  ;;  %507 = vmatpush.msrb.mxu3 %v5365_v22 }
 0x160   :  { %3542 = vmatmul.msk.f32.vlgmr.msrb.gmra.mxu1 %vm388_vm0, %v5359_v20 }
 0x164   :  { %540 = vrot.lane.b32.xlu1 %v5359_v20, %s5189_s0 }
 0x1c6   :  { %v515_v23 = vpop.permute.xlu0 %514 }
 0x1c7   :  { %3545 = vmatpush.xpose.msk.msra.mxu0 %vm388_vm0, %v515_v23  ;;  %v202_v23 = vld [vmem:[#allocation10 + $0x38] sm:$0xff] }
 0x1ce   :  { %v513_v24 = vpop.permute.xlu0 %512  ;;  %v543_v25 = vpop.permute.xlu1 %542 }
 0x1cf   :  { %3546 = vmatmul.msk.f32.vlgmr.msra.gmra.mxu0 %vm388_vm0, %v513_v24  ;;  %3547 = vmatpush.xpose.msk.msra.mxu1 %vm388_vm0, %v543_v25  ;;  %v201_v24 = vld [vmem:[#allocation10 + $0x30] sm:$0xff]  ;;  %v200_v25 = vld [vmem:[#allocation10 + $0x28] sm:$0xff] }
 0x1d3   :  { %693 = vmatpush.msrb.mxu1 %v198_v1 }
 0x1d4   :  { %v412_v26 = vpop.f32.mrf.mxu0 }
 0x1d5   :  { %v441_v27 = vmul.f32 0.17677669, %v412_v26  ;;  %694 = vmatpush.msrb.mxu1 %v197_v2  ;;  %v199_v26 = vld [vmem:[#allocation10 + $0x20] sm:$0xff] }
 0x1d6   :  { %v541_v28 = vpop.permute.xlu1 %540 }
 0x1d7   :  { %v444_v29 = vsel %vm443_vm1, %v441_v27, -inf  ;;  %3548 = vmatmul.msk.f32.vlgmr.msra.gmra.mxu1 %vm388_vm0, %v541_v28 }
 0x1d8   :  { %445 = vmax.xlane.f32.xlu2 %v444_v29  ;;  %695 = vmatpush.msrb.mxu1 %v196_v3 }
 0x1da   :  { %696 = vmatpush.msrb.mxu1 %v195_v5 }
 0x1dd   :  { %v438_v33 = vpop.f32.mrf.mxu1 }
 0x1de   :  { %v442_v42 = vmul.f32 0.17677669, %v438_v33 }
 0x1e0   :  { %v447_v43 = vsel %vm443_vm1, %v442_v42, -inf }
 0x24b   :  { %v446_v30 = vpop.xlane.xlu2 %445 }
 0x24c   :  { %v450_v31 = vsub.f32 %v441_v27, %v446_v30  ;;  %v537_v32 = vpop.f32.mrf.mxu0 }
 0x24d   :  { %v568_v34 = vmul.f32 0.17677669, %v537_v32 }
 0x24e   :  { %v452_v35 = vmul.f32 1.442695, %v450_v31 }
 0x24f   :  { %v570_v36 = vsel %vm443_vm1, %v568_v34, -inf }
 0x250   :  { %4879 = vpow2.f32 %v452_v35  ;;  %571 = vmax.xlane.f32.xlu2 %v570_v36 }
 0x254   :  { %v565_v38 = vpop.f32.mrf.mxu1 }
 0x255   :  { %v569_v40 = vmul.f32 0.17677669, %v565_v38 }
 0x256   :  { %v4880_v37 = vpop.eup %4879 }
 0x257   :  { %v456_v39 = vsel %vm443_vm1, %v4880_v37, 0.0  ;;  %v573_v41 = vsel %vm443_vm1, %v569_v40, -inf }
 0x258   :  { %457 = vadd.xlane.f32.xlu0 %v456_v39 }
 0x260   :  { %574 = vmax.xlane.f32.xlu0 %v573_v41 }
 0x268   :  { %593 = vrot.lane.b32.xlu2 %v5340_v15, %s5189_s0 }
 0x270   :  { %706 = vrot.lane.b32.xlu2 %v5338_v13, %s5181_s29 }
 0x278   :  { %704 = vrot.lane.b32.xlu2 %v5346_v16, %s5181_s29 }
 0x2a1   :  { %448 = vmax.xlane.f32.xlu2 %v447_v43 }
 0x2c3   :  { %v572_v44 = vpop.xlane.xlu2 %571 }
 0x2c4   :  { %v576_v45 = vsub.f32 %v568_v34, %v572_v44 }
 0x2c6   :  { %v578_v46 = vmul.f32 1.442695, %v576_v45 }
 0x2c8   :  { %4881 = vpow2.f32 %v578_v46 }
 0x2cb   :  { %v458_v47 = vpop.xlane.xlu0 %457  ;;  %v594_v48 = vpop.permute.xlu2 %593 }
 0x2cc   :  { %4883 = vrcp.f32 %v458_v47  ;;  %614 = vmatpush.msra.mxu2 %v594_v48 }
 0x2ce   :  { %v4882_v49 = vpop.eup %4881 }
 0x2cf   :  { %v582_v50 = vsel %vm443_vm1, %v4882_v49, 0.0 }
 0x2d0   :  { %583 = vadd.xlane.f32.xlu1 %v582_v50  ;;  %v206_v50 = vld [vmem:[#allocation10 + $0x58] sm:$0xff] }
 0x2d1   :  { %854 = vmatpush.msrb.mxu0 %v206_v50 }
 0x2d2   :  { %v4884_v51 = vpop.eup %4883 }
 0x2d3   :  { %v575_v52 = vpop.xlane.xlu0 %574  ;;  %v707_v53 = vpop.permute.xlu2 %706  ;;  %v464_v54 = vmul.f32 %v4884_v51, %v4880_v37  ;;  %v205_v51 = vld [vmem:[#allocation10 + $0x50] sm:$0xff] }
 0x2d4   :  { %v577_v55 = vsub.f32 %v569_v40, %v575_v52  ;;  %855 = vmatpush.msrb.mxu0 %v205_v51  ;;  %v204_v52 = vld [vmem:[#allocation10 + $0x48] sm:$0xff]  ;;  %v5191_v51 = vmov 128.0  }
 0x2d5   :  { %3543 = vmatmul.msk.f32.vlgmr.msrb.gmra.mxu2 %vm443_vm1, %v464_v54 }
 0x2d6   :  { %v580_v56 = vmul.f32 1.442695, %v577_v55  ;;  %3555 = vmatpush.xpose.msk.msrb.mxu2 %vm388_vm0, %v707_v53  ;;  %856 = vmatpush.msrb.mxu0 %v204_v52  ;;  %v203_v53 = vld [vmem:[#allocation10 + $0x40] sm:$0xff] }
 0x2d8   :  { %4885 = vpow2.f32 %v580_v56  ;;  %857 = vmatpush.msrb.mxu0 %v203_v53 }
 0x2db   :  { %v705_v59 = vpop.permute.xlu2 %704 }
 0x2de   :  { %v4886_v57 = vpop.eup %4885 }
 0x2df   :  { %v585_v58 = vsel %vm443_vm1, %v4886_v57, 0.0 }
 0x2e0   :  { %586 = vadd.xlane.f32.xlu0 %v585_v58 }
 0x314   :  { %v449_v60 = vpop.xlane.xlu2 %448 }
 0x315   :  { %v451_v61 = vsub.f32 %v442_v42, %v449_v60 }
 0x317   :  { %v454_v62 = vmul.f32 1.442695, %v451_v61 }
 0x319   :  { %4887 = vpow2.f32 %v454_v62 }
 0x31f   :  { %v4888_v63 = vpop.eup %4887 }
 0x320   :  { %v459_v0 = vsel %vm443_vm1, %v4888_v63, 0.0 }
 0x321   :  { %460 = vadd.xlane.f32.xlu1 %v459_v0 }
 0x33a   :  { %620 = vrot.lane.b32.xlu1 %v5365_v22, %s5189_s0 }
 0x342   :  { %732 = vrot.lane.b32.xlu1 %v5359_v20, %s5181_s29 }
 0x343   :  { %v584_v7 = vpop.xlane.xlu1 %583 }
 0x344   :  { %4889 = vrcp.f32 %v584_v7 }
 0x34a   :  { %v4890_v8 = vpop.eup %4889  ;;  %869 = vrot.lane.b32.xlu1 %v5338_v13, %s5190_s4 }
 0x34b   :  { %v590_v9 = vmul.f32 %v4890_v8, %v4882_v49 }
 0x34d   :  { %3549 = vmatmul.msk.f32.vlgmr.msra.gmra.mxu2 %vm443_vm1, %v590_v9 }
 0x352   :  { %897 = vrot.lane.b32.xlu1 %v5351_v18, %s5190_s4 }
 0x353   :  { %v587_v17 = vpop.xlane.xlu0 %586 }
 0x355   :  { %3556 = vmatmul.msk.f32.vlgmr.msrb.gmra.mxu2 %vm388_vm0, %v705_v59 }
 0x358   :  { %v486_v10 = vpop.f32.mrf.mxu2 }
 0x359   :  { %3553 = vmatmul.msk.f32.vlgmr.msrb.gmra.mxu1 %vm388_vm0, %v486_v10 }
 0x394   :  { %v461_v11 = vpop.xlane.xlu1 %460 }
 0x395   :  { %4891 = vrcp.f32 %v461_v11 }
 0x396   :  { %4893 = vrcp.f32 %v587_v17 }
 0x39b   :  { %v4892_v12 = vpop.eup %4891 }
 0x39c   :  { %v465_v14 = vmul.f32 %v4892_v12, %v4888_v63  ;;  %v4894_v13 = vpop.eup %4893 }
 0x39d   :  { %v591_v19 = vmul.f32 %v4894_v13, %v4886_v57 }
 0x39e   :  { %3544 = vmatmul.msk.f32.vlgmr.msrb.gmra.mxu3 %vm443_vm1, %v465_v14 }
 0x3ac   :  { %v621_v21 = vpop.permute.xlu1 %620 }
 0x3ad   :  { %641 = vmatpush.msra.mxu3 %v621_v21 }
 0x3ae   :  { %3550 = vmatmul.msk.f32.vlgmr.msra.gmra.mxu3 %vm443_vm1, %v591_v19 }
 0x3af   :  { %664 = vmatpush.msrb.mxu3 %v202_v23 }
 0x3b1   :  { %665 = vmatpush.msrb.mxu3 %v201_v24 }
 0x3b3   :  { %666 = vmatpush.msrb.mxu3 %v200_v25 }
 0x3b4   :  { %v733_v27 = vpop.permute.xlu1 %732 }
 0x3b5   :  { %667 = vmatpush.msrb.mxu3 %v199_v26 }
 0x3bc   :  { %v870_v28 = vpop.permute.xlu1 %869 }
 0x3bd   :  { %3563 = vmatpush.xpose.msk.msra.mxu1 %vm388_vm0, %v870_v28  ;;  %v210_v28 = vld [vmem:[#allocation10 + $0x78] sm:$0xff] }
 0x3c4   :  { %v898_v40 = vpop.permute.xlu1 %897 }
 0x3d0   :  { %v616_v29 = vpop.f32.mrf.mxu2 }
 0x3d1   :  { %3551 = vmatmul.msk.f32.vlgmr.msrb.gmra.mxu3 %vm388_vm0, %v616_v29  ;;  %v209_v29 = vld [vmem:[#allocation10 + $0x70] sm:$0xff] }
 0x3d6   :  { %v5426_v54 = vpop.f32.mrf.mxu1 }
 0x3d8   :  { %v729_v30 = vpop.f32.mrf.mxu2 }
 0x3d9   :  { %v760_v31 = vmul.f32 0.17677669, %v729_v30 }
 0x3db   :  { %v762_v32 = vsel %vm443_vm1, %v760_v31, -inf }
 0x3dc   :  { %763 = vmax.xlane.f32.xlu0 %v762_v32 }
 0x3f0   :  { %734 = vrot.lane.b32.xlu0 %v5351_v18, %s5181_s29 }
 0x3f8   :  { %784 = vrot.lane.b32.xlu0 %v5340_v15, %s5181_s29 }
 0x400   :  { %895 = vrot.lane.b32.xlu0 %v5359_v20, %s5190_s4 }
 0x421   :  { %v509_v33 = vpop.f32.mrf.mxu3 }
 0x422   :  { %3554 = vmatmul.msk.f32.gmra.mxu1 %vm388_vm0, %v509_v33 }
 0x431   :  { %v643_v34 = vpop.f32.mrf.mxu3 }
 0x432   :  { %3552 = vmatmul.msk.f32.gmra.mxu3 %vm388_vm0, %v643_v34  ;;  %v208_v34 = vld [vmem:[#allocation10 + $0x68] sm:$0xff] }
 0x44f   :  { %v764_v35 = vpop.xlane.xlu0 %763 }
 0x450   :  { %v768_v36 = vsub.f32 %v760_v31, %v764_v35  ;;  %v207_v35 = vld [vmem:[#allocation10 + $0x60] sm:$0xff] }
 0x452   :  { %v770_v37 = vmul.f32 1.442695, %v768_v36 }
 0x454   :  { %4895 = vpow2.f32 %v770_v37  ;;  %v5419_v45 = vpop.f32.mrf.mxu3 }
 0x45a   :  { %v4896_v38 = vpop.eup %4895 }
 0x45b   :  { %v774_v39 = vsel %vm443_vm1, %v4896_v38, 0.0 }
 0x45c   :  { %775 = vadd.xlane.f32.xlu2 %v774_v39  ;;  %v699_v39 = vadd.f32 %v5426_v54, %v5419_v45  ;;  %v4715_v54 = vld [vmem:[#allocation11 + $0x3bc] sm:$0xf0] }
 0x462   :  { %v735_v18 = vpop.permute.xlu0 %734 }
 0x463   :  { %3557 = vmatpush.xpose.msk.msra.mxu3 %vm388_vm0, %v735_v18 }
 0x466   :  { %3558 = vmatmul.msk.f32.vlgmr.msra.gmra.mxu3 %vm388_vm0, %v733_v27 }
 0x46a   :  { %v785_v20 = vpop.permute.xlu0 %784 }
 0x46b   :  { %805 = vmatpush.msra.mxu2 %v785_v20  ;;  %v4872_v20 = vld [vmem:[%s5573_s6] ss:$0 sm:$0xff] }
 0x46d   :  { %3565 = vmatpush.xpose.msk.msrb.mxu2 %vm388_vm0, %v898_v40 }
 0x472   :  { %v896_v46 = vpop.permute.xlu0 %895 }
 0x474   :  { %867 = vrot.lane.b32.xlu2 %v5346_v16, %s5190_s4 }
 0x49f   :  { %v5428_v55 = vpop.f32.mrf.mxu1 }
 0x4b5   :  { %v5422_v47 = vpop.f32.mrf.mxu3 }
 0x4cf   :  { %v776_v41 = vpop.xlane.xlu2 %775 }
 0x4d0   :  { %4897 = vrcp.f32 %v776_v41 }
 0x4d6   :  { %v4898_v42 = vpop.eup %4897 }
 0x4d7   :  { %v782_v43 = vmul.f32 %v4898_v42, %v4896_v38  ;;  %v868_v44 = vpop.permute.xlu2 %867 }
 0x4d8   :  { %3564 = vmatmul.msk.f32.vlgmr.msra.gmra.mxu1 %vm388_vm0, %v868_v44  ;;  %v702_v44 = vadd.f32 %v5428_v55, %v5422_v47  ;;  %v4707_v55 = vld [vmem:[#allocation11 + $0x384] sm:$0xf] }
 0x4d9   :  { %3559 = vmatmul.msk.f32.vlgmr.msra.gmra.mxu2 %vm443_vm1, %v782_v43 }
 0x4da   :  { %1017 = vmatpush.msra.mxu2 %v210_v28  ;;  %v3903_v28 = vld [vmem:[#allocation11 + $0x2c8] sm:$0xf0] }
 0x4dc   :  { %1018 = vmatpush.msra.mxu2 %v209_v29 }
 0x4de   :  { %1019 = vmatpush.msra.mxu2 %v208_v34  ;;  %v3837_v34 = vld [vmem:[#allocation11 + $0x208] sm:$0xf] }
 0x4e0   :  { %1020 = vmatpush.msra.mxu2 %v207_v35  ;;  %v4668_v35 = vld [vmem:[#allocation11 + $0x244] sm:$0xf0] }
 0x4e1   :  { %3566 = vmatmul.msk.f32.vlgmr.msrb.gmra.mxu2 %vm388_vm0, %v896_v46 }
 0x4e9   :  { %v757_v48 = vpop.f32.mrf.mxu3 }
 0x4ea   :  { %v761_v49 = vmul.f32 0.17677669, %v757_v48 }
 0x4ec   :  { %v765_v16 = vsel %vm443_vm1, %v761_v49, -inf }
 0x4ed   :  { %766 = vmax.xlane.f32.xlu1 %v765_v16 }
 0x555   :  { %v892_v56 = vpop.f32.mrf.mxu1 }
 0x556   :  { %v923_v57 = vmul.f32 0.17677669, %v892_v56 }
 0x558   :  { %v925_v58 = vsel %vm443_vm1, %v923_v57, -inf }
 0x559   :  { %926 = vmax.xlane.f32.xlu0 %v925_v58  ;;  %v4029_v58 = vld [vmem:[#allocation11 + $0x388] sm:$0xf] }
 0x55c   :  { %v807_v59 = vpop.f32.mrf.mxu2 }
 0x55d   :  { %3561 = vmatmul.msk.f32.vlgmr.msrb.gmra.mxu0 %vm388_vm0, %v807_v59  ;;  %v4716_v59 = vld [vmem:[#allocation11 + $0x3c4] sm:$0xf0] }
 0x560   :  { %v767_v60 = vpop.xlane.xlu1 %766 }
 0x561   :  { %v769_v61 = vsub.f32 %v761_v49, %v767_v60 }
 0x563   :  { %v772_v62 = vmul.f32 1.442695, %v769_v61  ;;  %v4030_v61 = vor.u32 %v4716_v59, %v4029_v58 }
 0x564   :  { %v920_v63 = vpop.f32.mrf.mxu2 }
 0x565   :  { %4899 = vpow2.f32 %v772_v62  ;;  %v924_v0 = vmul.f32 0.17677669, %v920_v63  ;;  %v4031_v62 = vld [vmem:[#allocation11 + $0x3c8] sm:$0xf0]  ;;  %v3957_v63 = vld [vmem:[#allocation11 + $0x300] sm:$0xf] }
 0x567   :  { %v928_v1 = vsel %vm443_vm1, %v924_v0, -inf }
 0x568   :  { %929 = vmax.xlane.f32.xlu2 %v928_v1  ;;  %v4699_v1 = vld [vmem:[#allocation11 + $0x33c] sm:$0xf0] }
 0x56b   :  { %v4900_v2 = vpop.eup %4899 }
 0x56c   :  { %v777_v3 = vsel %vm443_vm1, %v4900_v2, 0.0 }
 0x56d   :  { %778 = vadd.xlane.f32.xlu1 %v777_v3  ;;  %v3959_v3 = vld [vmem:[#allocation11 + $0x340] sm:$0xf0] }
 0x586   :  { %810 = vrot.lane.b32.xlu1 %v5365_v22, %s5181_s29 }
 0x5cc   :  { %v927_v5 = vpop.xlane.xlu0 %926 }
 0x5cd   :  { %v931_v7 = vsub.f32 %v923_v57, %v927_v5  ;;  %v4023_v57 = vld [vmem:[#allocation11 + $0x3c0] sm:$0xf0]  ;;  %v3958_v5 = vor.u32 %v4699_v1, %v3957_v63  ;;  %v3709_v1 = vld [vmem:[#allocation11 + $0x108] sm:$0xf] }
 0x5ce   :  { %v4026_v60 = vor.u32 %v4707_v55, %v4023_v57 }
 0x5cf   :  { %v933_v8 = vmul.f32 1.442695, %v931_v7 }
 0x5d1   :  { %4901 = vpow2.f32 %v933_v8  ;;  %v3965_v8 = vld [vmem:[#allocation11 + $0x308] sm:$0xf] }
 0x5d7   :  { %v4902_v9 = vpop.eup %4901 }
 0x5d8   :  { %v937_v10 = vsel %vm443_vm1, %v4902_v9, 0.0 }
 0x5d9   :  { %938 = vadd.xlane.f32.xlu0 %v937_v10  ;;  %v4692_v10 = vld [vmem:[#allocation11 + $0x30c] sm:$0xf] }
 0x5da   :  { %v859_v38 = vpop.f32.mrf.mxu0 }
 0x5db   :  { %v930_v11 = vpop.xlane.xlu2 %929  ;;  %v865_v18 = vadd.f32 %v859_v38, %v699_v39 }
 0x5dc   :  { %v932_v12 = vsub.f32 %v924_v0, %v930_v11 }
 0x5de   :  { %v935_v14 = vmul.f32 1.442695, %v932_v12  ;;  %v3967_v12 = vld [vmem:[#allocation11 + $0x348] sm:$0xf0] }
 0x5e0   :  { %4903 = vpow2.f32 %v935_v14  ;;  %v779_v19 = vpop.xlane.xlu1 %778  ;;  %v3893_v14 = vld [vmem:[#allocation11 + $0x280] sm:$0xf] }
 0x5e1   :  { %4905 = vrcp.f32 %v779_v19  ;;  %v4675_v19 = vld [vmem:[#allocation11 + $0x284] sm:$0xf] }
 0x5e6   :  { %v4904_v17 = vpop.eup %4903 }
 0x5e7   :  { %v940_v13 = vsel %vm443_vm1, %v4904_v17, 0.0  ;;  %v4906_v21 = vpop.eup %4905 }
 0x5e8   :  { %941 = vadd.xlane.f32.xlu2 %v940_v13  ;;  %v783_v23 = vmul.f32 %v4906_v21, %v4900_v2  ;;  %v4691_v2 = vld [vmem:[#allocation11 + $0x304] sm:$0xf]  ;;  %v3970_v13 = vor.u32 %v4692_v10, %v3967_v12  ;;  %v4619_v10 = vld [vmem:[#allocation11 + $0xbc] sm:$0xf0] }
 0x5e9   :  { %v3962_v7 = vor.u32 %v4691_v2, %v3959_v3  ;;  %v3895_v21 = vld [vmem:[#allocation11 + $0x2c0] sm:$0xf0]  ;;  %v4636_v2 = vld [vmem:[#allocation11 + $0x144] sm:$0xf0] }
 0x5ea   :  { %v3898_v29 = vor.u32 %v4675_v19, %v3895_v21 }
 0x5ed   :  { %947 = vrot.lane.b32.xlu0 %v5340_v15, %s5190_s4 }
 0x5f8   :  { %v811_v24 = vpop.permute.xlu1 %810 }
 0x5f9   :  { %831 = vmatpush.msrb.mxu3 %v811_v24 }
 0x5fa   :  { %3560 = vmatmul.msk.f32.vlgmr.msrb.gmra.mxu3 %vm443_vm1, %v783_v23  ;;  %v3901_v23 = vld [vmem:[#allocation11 + $0x288] sm:$0xf] }
 0x600   :  { %973 = vrot.lane.b32.xlu2 %v5365_v22, %s5190_s4 }
 0x64c   :  { %v939_v25 = vpop.xlane.xlu0 %938 }
 0x64d   :  { %4907 = vrcp.f32 %v939_v25 }
 0x653   :  { %v4908_v27 = vpop.eup %4907 }
 0x654   :  { %v945_v30 = vmul.f32 %v4908_v27, %v4902_v9  ;;  %v4700_v9 = vld [vmem:[#allocation11 + $0x344] sm:$0xf0]  ;;  %v4676_v27 = vld [vmem:[#allocation11 + $0x28c] sm:$0xf] }
 0x655   :  { %v3966_v11 = vor.u32 %v4700_v9, %v3965_v8  ;;  %v3711_v8 = vld [vmem:[#allocation11 + $0x148] sm:$0xf0] }
 0x65b   :  { %v942_v26 = vpop.xlane.xlu2 %941 }
 0x65c   :  { %4909 = vrcp.f32 %v942_v26  ;;  %v4684_v26 = vld [vmem:[#allocation11 + $0x2c4] sm:$0xf0] }
 0x65d   :  { %4911 = vrcp.f32 %v5191_v51 }
 0x65f   :  { %v948_v31 = vpop.permute.xlu0 %947 }
 0x660   :  { %968 = vmatpush.msra.mxu3 %v948_v31  ;;  %v3829_v31 = vld [vmem:[#allocation11 + $0x200] sm:$0xf] }
 0x661   :  { %3567 = vmatmul.msk.f32.vlgmr.msra.gmra.mxu3 %vm443_vm1, %v945_v30  ;;  %v3902_v30 = vor.u32 %v4684_v26, %v3901_v23  ;;  %v4612_v23 = vld [vmem:[#allocation11 + $0x8c] sm:$0xf]  ;;  %v3573_v26 = vld [vmem:[#allocation11] sm:$0xf] }
 0x662   :  { %v4910_v15 = vpop.eup %4909  ;;  %1911 = vmatpush.bf16.msrb.mxu3 %v4026_v60 }
 0x663   :  { %v946_v32 = vmul.f32 %v4910_v15, %v4904_v17  ;;  %v974_v33 = vpop.permute.xlu2 %973  ;;  %v5463_v52 = vpop.eup %4911  ;;  %v4683_v17 = vld [vmem:[#allocation11 + $0x2bc] sm:$0xf0] }
 0x664   :  { %994 = vmatpush.msrb.mxu1 %v974_v33  ;;  %v1042_v47 = vmul.f32 128.0, %v5463_v52  ;;  %v3894_v25 = vor.u32 %v4683_v17, %v3893_v14  ;;  %v4667_v15 = vld [vmem:[#allocation11 + $0x23c] sm:$0xf0]  ;;  %v3906_v33 = vor.u32 %v4676_v27, %v3903_v28  ;;  %vm1046_vm2 = vweird.f32 %v5463_v52  ;;  %v3639_v14 = vld [vmem:[#allocation11 + $0xc0] sm:$0xf0] }
 0x665   :  { %3568 = vmatmul.msk.f32.vlgmr.msrb.gmra.mxu1 %vm443_vm1, %v946_v32  ;;  %v4659_v32 = vld [vmem:[#allocation11 + $0x204] sm:$0xf]  ;;  %v3830_v39 = vor.u32 %v4667_v15, %v3829_v31  ;;  %v3645_v17 = vld [vmem:[#allocation11 + $0x88] sm:$0xf]  ;;  %v4603_v27 = vld [vmem:[#allocation11 + $0x3c] sm:$0xf0] }
 0x666   :  { %v1043_v53 = vsub.f32 1.0, %v1042_v47  ;;  %1925 = vmatpush.bf16.msra.mxu1 %v4030_v61  ;;  %1912 = vmatpush.bf16.msrb.mxu3 %v3962_v7  ;;  %v4628_v7 = vld [vmem:[#allocation11 + $0x10c] sm:$0xf]  ;;  %v4595_v28 = vld [vmem:[#allocation11 + $0x4] sm:$0xf] }
 0x667   :  { %v3714_v9 = vor.u32 %v4628_v7, %v3711_v8  ;;  %v3581_v31 = vld [vmem:[#allocation11 + $0x8] sm:$0xf]  ;;  %v3919_v7 = vld [vmem:[#allocation11 + $0x2d8] sm:$0xf0] }
 0x668   :  { %v1044_v24 = vmul.f32 %v5463_v52, %v1043_v53  ;;  %v4604_v15 = vld [vmem:[#allocation11 + $0x44] sm:$0xf0] }
 0x66a   :  { %1926 = vmatpush.bf16.msra.mxu1 %v3966_v11  ;;  %v1045_v38 = vadd.f32 %v5463_v52, %v1044_v24  ;;  %1913 = vmatpush.bf16.msrb.mxu3 %v3898_v29  ;;  %v4611_v11 = vld [vmem:[#allocation11 + $0x84] sm:$0xf]  ;;  %v3647_v24 = vld [vmem:[#allocation11 + $0xc8] sm:$0xf0]  ;;  %v3574_v29 = vor.u32 %v4603_v27, %v3573_v26  ;;  %v4653_v26 = vld [vmem:[#allocation11 + $0x1cc] sm:$0xf0] }
 0x66b   :  { %v3642_v19 = vor.u32 %v4611_v11, %v3639_v14  ;;  %v3853_v14 = vld [vmem:[#allocation11 + $0x218] sm:$0xf]  ;;  %v4645_v27 = vld [vmem:[#allocation11 + $0x194] sm:$0xf] }
 0x66c   :  { %v5470_v51 = vsel %vm1046_vm2, %v5463_v52, %v1045_v38  ;;  %v4709_v38 = vld [vmem:[#allocation11 + $0x394] sm:$0xf] }
 0x66e   :  { %1927 = vmatpush.bf16.msra.mxu1 %v3902_v30  ;;  %v3575_v30 = vld [vmem:[#allocation11 + $0x40] sm:$0xf0] }
 0x67d   :  { %v833_v22 = vpop.f32.mrf.mxu3 }
 0x67e   :  { %3562 = vmatmul.msk.f32.gmra.mxu0 %vm388_vm0, %v833_v22  ;;  %v3831_v22 = vld [vmem:[#allocation11 + $0x240] sm:$0xf0] }
 0x6e2   :  { %v996_v37 = vpop.f32.mrf.mxu1 }
 0x6e4   :  { %v970_v36 = vpop.f32.mrf.mxu3 }
 0x6e5   :  { %3569 = vmatmul.msk.f32.vlgmr.msra.gmra.mxu2 %vm388_vm0, %v970_v36  ;;  %v4660_v36 = vld [vmem:[#allocation11 + $0x20c] sm:$0xf] }
 0x6ed   :  { %3570 = vmatmul.msk.f32.gmra.mxu2 %vm388_vm0, %v996_v37  ;;  %v3839_v37 = vld [vmem:[#allocation11 + $0x248] sm:$0xf0] }
 0x6fb   :  { %v862_v43 = vpop.f32.mrf.mxu0 }
 0x6fc   :  { %v866_v48 = vadd.f32 %v862_v43, %v702_v44  ;;  %v3842_v43 = vor.u32 %v4660_v36, %v3839_v37  ;;  %v3767_v44 = vld [vmem:[#allocation11 + $0x1c0] sm:$0xf0]  ;;  %v4717_v37 = vld [vmem:[#allocation11 + $0x3cc] sm:$0xf0] }
 0x768   :  { %v1022_v40 = vpop.f32.mrf.mxu2 }
 0x769   :  { %v1028_v41 = vadd.f32 %v1022_v40, %v865_v18  ;;  %v3834_v18 = vor.u32 %v4659_v32, %v3831_v22  ;;  %v3765_v40 = vld [vmem:[#allocation11 + $0x180] sm:$0xf]  ;;  %v3578_v32 = vor.u32 %v4595_v28, %v3575_v30  ;;  %v4596_v22 = vld [vmem:[#allocation11 + $0xc] sm:$0xf]  ;;  %v3789_v30 = vld [vmem:[#allocation11 + $0x198] sm:$0xf] }
 0x76b   :  { %v1033_v42 = vadd.f32 %v4872_v20, %v1028_v41  ;;  %v4651_v41 = vld [vmem:[#allocation11 + $0x1bc] sm:$0xf0]  ;;  %1914 = vmatpush.bf16.msrb.mxu3 %v3834_v18 }
 0x76c   :  { %v3766_v47 = vor.u32 %v4651_v41, %v3765_v40  ;;  %v4045_v40 = vld [vmem:[#allocation11 + $0x398] sm:$0xf] }
 0x76d   :  { %v5456_v46 = vadd.f32 %v1033_v42, %v5325_v4  ;;  %v4021_v4 = vld [vmem:[#allocation11 + $0x380] sm:$0xf]  ;;  %v4643_v42 = vld [vmem:[#allocation11 + $0x184] sm:$0xf]  ;;  %v4718_v41 = vld [vmem:[#allocation11 + $0x3d4] sm:$0xf0] }
 0x76e   :  { %v4022_v56 = vor.u32 %v4715_v54, %v4021_v4  ;;  %v3770_v53 = vor.u32 %v4643_v42, %v3767_v44  ;;  %v4710_v42 = vld [vmem:[#allocation11 + $0x39c] sm:$0xf] }
 0x76f   :  { %1037 = vadd.xlane.f32.xlu0 %v5456_v46  ;;  %v4047_v44 = vld [vmem:[#allocation11 + $0x3d8] sm:$0xf0] }
 0x770   :  { %v1025_v49 = vpop.f32.mrf.mxu2  ;;  %1897 = vmatpush.bf16.msra.mxu0 %v4022_v56  ;;  %1915 = vmatpush.bf16.msrb.mxu3 %v3770_v53  ;;  %v3975_v53 = vld [vmem:[#allocation11 + $0x350] sm:$0xf0] }
 0x771   :  { %v1029_v45 = vadd.f32 %v1025_v49, %v866_v48  ;;  %v3773_v48 = vld [vmem:[#allocation11 + $0x188] sm:$0xf] }
 0x772   :  { %v4652_v49 = vld [vmem:[#allocation11 + $0x1c4] sm:$0xf0] }
 0x773   :  { %v1034_v16 = vadd.f32 %v4872_v20, %v1029_v45  ;;  %v3838_v20 = vor.u32 %v4668_v35, %v3837_v34  ;;  %v4644_v45 = vld [vmem:[#allocation11 + $0x18c] sm:$0xf]  ;;  %v3774_v4 = vor.u32 %v4652_v49, %v3773_v48  ;;  %v4037_v35 = vld [vmem:[#allocation11 + $0x390] sm:$0xf] }
 0x774   :  { %1898 = vmatpush.bf16.msra.mxu0 %v3958_v5  ;;  %v3710_v5 = vor.u32 %v4636_v2, %v3709_v1  ;;  %v3583_v34 = vld [vmem:[#allocation11 + $0x48] sm:$0xf0]  ;;  %v4038_v18 = vor.u32 %v4717_v37, %v4037_v35  ;;  %v3973_v48 = vld [vmem:[#allocation11 + $0x310] sm:$0xf]  ;;  %v4686_v1 = vld [vmem:[#allocation11 + $0x2d4] sm:$0xf0] }
 0x775   :  { %v5460_v50 = vadd.f32 %v1034_v16, %v5330_v6  ;;  %v4708_v6 = vld [vmem:[#allocation11 + $0x38c] sm:$0xf]  ;;  %1928 = vmatpush.bf16.msra.mxu1 %v3838_v20  ;;  %v3586_v36 = vor.u32 %v4596_v22, %v3583_v34  ;;  %v4701_v49 = vld [vmem:[#allocation11 + $0x34c] sm:$0xf0]  ;;  %v3791_v22 = vld [vmem:[#allocation11 + $0x1d8] sm:$0xf0] }
 0x776   :  { %v4034_v0 = vor.u32 %v4708_v6, %v4031_v62  ;;  %v3775_v16 = vld [vmem:[#allocation11 + $0x1c8] sm:$0xf0]  ;;  %v3701_v6 = vld [vmem:[#allocation11 + $0x100] sm:$0xf]  ;;  %v4627_v62 = vld [vmem:[#allocation11 + $0x104] sm:$0xf] }
 0x777   :  { %1039 = vadd.xlane.f32.xlu1 %v5460_v50  ;;  %v3778_v55 = vor.u32 %v4644_v45, %v3775_v16  ;;  %v4050_v45 = vor.u32 %v4710_v42, %v4047_v44  ;;  %v3974_v16 = vor.u32 %v4701_v49, %v3973_v48  ;;  %v3717_v35 = vld [vmem:[#allocation11 + $0x110] sm:$0xf]  ;;  %v4629_v37 = vld [vmem:[#allocation11 + $0x114] sm:$0xf]  ;;  %v4630_v42 = vld [vmem:[#allocation11 + $0x11c] sm:$0xf] }
 0x778   :  { %1939 = vmatpush.bf16.msrb.mxu2 %v4034_v0  ;;  %1899 = vmatpush.bf16.msra.mxu0 %v3894_v25  ;;  %v3703_v0 = vld [vmem:[#allocation11 + $0x140] sm:$0xf0]  ;;  %v3650_v25 = vor.u32 %v4612_v23, %v3647_v24  ;;  %v3855_v23 = vld [vmem:[#allocation11 + $0x258] sm:$0xf0]  ;;  %v3653_v49 = vld [vmem:[#allocation11 + $0x90] sm:$0xf] }
 0x779   :  { %1929 = vmatpush.bf16.msra.mxu1 %v3774_v4  ;;  %v3706_v3 = vor.u32 %v4627_v62, %v3703_v0  ;;  %v3981_v4 = vld [vmem:[#allocation11 + $0x318] sm:$0xf] }
 0x77a   :  { %v3917_v0 = vld [vmem:[#allocation11 + $0x298] sm:$0xf] }
 0x77b   :  { %1916 = vmatpush.bf16.msrb.mxu3 %v3706_v3  ;;  %v3918_v3 = vor.u32 %v4686_v1, %v3917_v0  ;;  %v3591_v1 = vld [vmem:[#allocation11 + $0x50] sm:$0xf0] }
 0x77c   :  { %1940 = vmatpush.bf16.msrb.mxu2 %v3970_v13  ;;  %1900 = vmatpush.bf16.msra.mxu0 %v3830_v39  ;;  %v4620_v13 = vld [vmem:[#allocation11 + $0xc4] sm:$0xf0]  ;;  %v4039_v39 = vld [vmem:[#allocation11 + $0x3d0] sm:$0xf0] }
 0x77d   :  { %1930 = vmatpush.bf16.msra.mxu1 %v3710_v5  ;;  %v3646_v21 = vor.u32 %v4620_v13, %v3645_v17  ;;  %v4042_v20 = vor.u32 %v4709_v38, %v4039_v39  ;;  %v4678_v5 = vld [vmem:[#allocation11 + $0x29c] sm:$0xf]  ;;  %v4670_v17 = vld [vmem:[#allocation11 + $0x254] sm:$0xf0]  ;;  %v3719_v39 = vld [vmem:[#allocation11 + $0x150] sm:$0xf0] }
 0x77e   :  { %v3922_v8 = vor.u32 %v4678_v5, %v3919_v7 }
 0x77f   :  { %1917 = vmatpush.bf16.msrb.mxu3 %v3642_v19  ;;  %v3854_v19 = vor.u32 %v4670_v17, %v3853_v14 }
 0x780   :  { %1941 = vmatpush.bf16.msrb.mxu2 %v3906_v33  ;;  %1901 = vmatpush.bf16.msra.mxu0 %v3766_v47  ;;  %v3582_v33 = vor.u32 %v4604_v15, %v3581_v31  ;;  %v4693_v47 = vld [vmem:[#allocation11 + $0x314] sm:$0xf]  ;;  %v4654_v31 = vld [vmem:[#allocation11 + $0x1d4] sm:$0xf0] }
 0x781   :  { %1931 = vmatpush.bf16.msra.mxu1 %v3646_v21  ;;  %v4662_v21 = vld [vmem:[#allocation11 + $0x21c] sm:$0xf] }
 0x782   :  { %v3858_v24 = vor.u32 %v4662_v21, %v3855_v23 }
 0x783   :  { %1918 = vmatpush.bf16.msrb.mxu3 %v3578_v32  ;;  %v3790_v32 = vor.u32 %v4654_v31, %v3789_v30  ;;  %v4873_v30 = vld [vmem:[%s5574_s7] ss:$0 sm:$0xff] }
 0x784   :  { %1942 = vmatpush.bf16.msrb.mxu2 %v3842_v43  ;;  %v4046_v43 = vor.u32 %v4718_v41, %v4045_v40  ;;  %v3722_v40 = vor.u32 %v4629_v37, %v3719_v39  ;;  %v4719_v37 = vld [vmem:[#allocation11 + $0x3dc] sm:$0xf0]  ;;  %v4055_v39 = vld [vmem:[#allocation11 + $0x3e0] sm:$0xf0] }
 0x785   :  { %1932 = vmatpush.bf16.msra.mxu1 %v3582_v33  ;;  %v4646_v33 = vld [vmem:[#allocation11 + $0x19c] sm:$0xf] }
 0x786   :  { %v3794_v34 = vor.u32 %v4646_v33, %v3791_v22  ;;  %v4874_v33 = vld [vmem:[%s5575_s8] ss:$0 sm:$0xff] }
 0x787   :  { %1967 = vmatpush.bf16.msra.mxu3 %v4042_v20  ;;  %v4638_v20 = vld [vmem:[#allocation11 + $0x154] sm:$0xf0] }
 0x788   :  { %1943 = vmatpush.bf16.msrb.mxu2 %v3778_v55  ;;  %v4702_v55 = vld [vmem:[#allocation11 + $0x354] sm:$0xf0] }
 0x789   :  { %1981 = vmatpush.bf16.msrb.mxu1 %v4046_v43  ;;  %v3727_v43 = vld [vmem:[#allocation11 + $0x158] sm:$0xf0] }
 0x78a   :  { %v3730_v44 = vor.u32 %v4630_v42, %v3727_v43  ;;  %v4063_v42 = vld [vmem:[#allocation11 + $0x3e8] sm:$0xf0] }
 0x78c   :  { %1944 = vmatpush.bf16.msrb.mxu2 %v3714_v9  ;;  %v3845_v9 = vld [vmem:[#allocation11 + $0x210] sm:$0xf] }
 0x790   :  { %1945 = vmatpush.bf16.msrb.mxu2 %v3650_v25  ;;  %v3781_v25 = vld [vmem:[#allocation11 + $0x190] sm:$0xf] }
 0x791   :  { %v3782_v28 = vor.u32 %v4653_v26, %v3781_v25 }
 0x794   :  { %1946 = vmatpush.bf16.msrb.mxu2 %v3586_v36  ;;  %v4637_v36 = vld [vmem:[#allocation11 + $0x14c] sm:$0xf0] }
 0x795   :  { %v3718_v38 = vor.u32 %v4637_v36, %v3717_v35  ;;  %v4053_v36 = vld [vmem:[#allocation11 + $0x3a0] sm:$0xf] }
 0x798   :  { %1995 = vmatpush.bf16.msra.mxu2 %v4050_v45  ;;  %v4621_v45 = vld [vmem:[#allocation11 + $0xcc] sm:$0xf0] }
 0x7e2   :  { %v1038_v54 = vpop.xlane.xlu0 %1037 }
 0x7e3   :  { %v1048_v56 = vmul.f32 %v5470_v51, %v1038_v54  ;;  %v3978_v54 = vor.u32 %v4693_v47, %v3975_v53  ;;  %v3654_v53 = vor.u32 %v4621_v45, %v3653_v49  ;;  %v4703_v49 = vld [vmem:[#allocation11 + $0x35c] sm:$0xf0] }
 0x7e5   :  { %v5474_v57 = vsub.f32 %v5456_v46, %v1048_v56  ;;  %v4635_v46 = vld [vmem:[#allocation11 + $0x13c] sm:$0xf0]  ;;  %v4694_v56 = vld [vmem:[#allocation11 + $0x31c] sm:$0xf]  ;;  %1968 = vmatpush.bf16.msra.mxu3 %v3978_v54  ;;  %v3661_v54 = vld [vmem:[#allocation11 + $0x98] sm:$0xf] }
 0x7e6   :  { %v3702_v63 = vor.u32 %v4635_v46, %v3701_v6  ;;  %v4685_v6 = vld [vmem:[#allocation11 + $0x2cc] sm:$0xf0]  ;;  %v4677_v46 = vld [vmem:[#allocation11 + $0x294] sm:$0xf] }
 0x7e7   :  { %v1052_v52 = vmul.f32 %v5474_v57, %v5474_v57 }
 0x7e8   :  { %1902 = vmatpush.bf16.msra.mxu0 %v3702_v63  ;;  %v3911_v63 = vld [vmem:[#allocation11 + $0x2d0] sm:$0xf0] }
 0x7e9   :  { %1054 = vadd.xlane.f32.xlu2 %v1052_v52  ;;  %v3983_v52 = vld [vmem:[#allocation11 + $0x358] sm:$0xf0]  ;;  %v3914_v2 = vor.u32 %v4677_v46, %v3911_v63  ;;  %v3589_v46 = vld [vmem:[#allocation11 + $0x10] sm:$0xf]  ;;  %v4597_v63 = vld [vmem:[#allocation11 + $0x14] sm:$0xf] }
 0x7ea   :  { %v1040_v58 = vpop.xlane.xlu1 %1039  ;;  %v3594_v5 = vor.u32 %v4597_v63, %v3591_v1  ;;  %v3927_v63 = vld [vmem:[#allocation11 + $0x2e0] sm:$0xf0]  ;;  %v4688_v1 = vld [vmem:[#allocation11 + $0x2e4] sm:$0xf0] }
 0x7eb   :  { %v1049_v59 = vmul.f32 %v5470_v51, %v1040_v58  ;;  %v3982_v58 = vor.u32 %v4702_v55, %v3981_v4  ;;  %1969 = vmatpush.bf16.msra.mxu3 %v3914_v2  ;;  %v3655_v4 = vld [vmem:[#allocation11 + $0xd0] sm:$0xf0]  ;;  %v4622_v55 = vld [vmem:[#allocation11 + $0xd4] sm:$0xf0] }
 0x7ec   :  { %v3597_v2 = vld [vmem:[#allocation11 + $0x18] sm:$0xf] }
 0x7ed   :  { %v5480_v60 = vsub.f32 %v5460_v50, %v1049_v59  ;;  %v3637_v50 = vld [vmem:[#allocation11 + $0x80] sm:$0xf]  ;;  %v3986_v59 = vor.u32 %v4694_v56, %v3983_v52  ;;  %1982 = vmatpush.bf16.msrb.mxu1 %v3982_v58  ;;  %v3662_v52 = vor.u32 %v4622_v55, %v3661_v54  ;;  %v4614_v58 = vld [vmem:[#allocation11 + $0x9c] sm:$0xf]  ;;  %v4704_v54 = vld [vmem:[#allocation11 + $0x364] sm:$0xf0] }
 0x7ee   :  { %v3638_v12 = vor.u32 %v4619_v10, %v3637_v50  ;;  %v4669_v50 = vld [vmem:[#allocation11 + $0x24c] sm:$0xf0]  ;;  %v4661_v10 = vld [vmem:[#allocation11 + $0x214] sm:$0xf]  ;;  %v4696_v55 = vld [vmem:[#allocation11 + $0x32c] sm:$0xf] }
 0x7ef   :  { %v1053_v61 = vmul.f32 %v5480_v60, %v5480_v60  ;;  %1996 = vmatpush.bf16.msra.mxu2 %v3986_v59  ;;  %v3846_v11 = vor.u32 %v4669_v50, %v3845_v9  ;;  %v3663_v59 = vld [vmem:[#allocation11 + $0xd8] sm:$0xf0] }
 0x7f0   :  { %1903 = vmatpush.bf16.msra.mxu0 %v3638_v12  ;;  %v3847_v12 = vld [vmem:[#allocation11 + $0x250] sm:$0xf0]  ;;  %v3599_v9 = vld [vmem:[#allocation11 + $0x58] sm:$0xf0] }
 0x7f1   :  { %1056 = vadd.xlane.f32.xlu0 %v1053_v61  ;;  %v3909_v61 = vld [vmem:[#allocation11 + $0x290] sm:$0xf]  ;;  %1983 = vmatpush.bf16.msrb.mxu1 %v3918_v3  ;;  %v3850_v13 = vor.u32 %v4661_v10, %v3847_v12  ;;  %v4606_v3 = vld [vmem:[#allocation11 + $0x54] sm:$0xf0] }
 0x7f2   :  { %v3910_v62 = vor.u32 %v4685_v6, %v3909_v61  ;;  %v3666_v6 = vor.u32 %v4614_v58, %v3663_v59  ;;  %v3598_v7 = vor.u32 %v4606_v3, %v3597_v2  ;;  %v3925_v59 = vld [vmem:[#allocation11 + $0x2a0] sm:$0xf]  ;;  %v4680_v2 = vld [vmem:[#allocation11 + $0x2ac] sm:$0xf] }
 0x7f3   :  { %1997 = vmatpush.bf16.msra.mxu2 %v3922_v8  ;;  %1970 = vmatpush.bf16.msra.mxu3 %v3850_v13  ;;  %v4598_v8 = vld [vmem:[#allocation11 + $0x1c] sm:$0xf]  ;;  %v3935_v3 = vld [vmem:[#allocation11 + $0x2e8] sm:$0xf0] }
 0x7f4   :  { %1904 = vmatpush.bf16.msra.mxu0 %v3574_v29  ;;  %v3783_v29 = vld [vmem:[#allocation11 + $0x1d0] sm:$0xf0]  ;;  %v3602_v50 = vor.u32 %v4598_v8, %v3599_v9  ;;  %v3861_v8 = vld [vmem:[#allocation11 + $0x220] sm:$0xf] }
 0x7f5   :  { %1984 = vmatpush.bf16.msrb.mxu1 %v3854_v19  ;;  %v3786_v15 = vor.u32 %v4645_v27, %v3783_v29  ;;  %v4671_v9 = vld [vmem:[#allocation11 + $0x25c] sm:$0xf0] }
 0x7f7   :  { %1998 = vmatpush.bf16.msra.mxu2 %v3858_v24  ;;  %1971 = vmatpush.bf16.msra.mxu3 %v3786_v15 }
 0x7f8   :  { %1953 = vmatpush.bf16.msrb.mxu0 %v4038_v18  ;;  %v3725_v18 = vld [vmem:[#allocation11 + $0x118] sm:$0xf] }
 0x7f9   :  { %1985 = vmatpush.bf16.msrb.mxu1 %v3790_v32  ;;  %v3726_v41 = vor.u32 %v4638_v20, %v3725_v18  ;;  %v4061_v18 = vld [vmem:[#allocation11 + $0x3a8] sm:$0xf] }
 0x7fb   :  { %1999 = vmatpush.bf16.msra.mxu2 %v3794_v34  ;;  %1972 = vmatpush.bf16.msra.mxu3 %v3722_v40  ;;  %v4720_v40 = vld [vmem:[#allocation11 + $0x3e4] sm:$0xf0] }
 0x7fc   :  { %1954 = vmatpush.bf16.msrb.mxu0 %v3974_v16  ;;  %v4613_v16 = vld [vmem:[#allocation11 + $0x94] sm:$0xf]  ;;  %v4062_v45 = vor.u32 %v4720_v40, %v4061_v18  ;;  %v3741_v18 = vld [vmem:[#allocation11 + $0x128] sm:$0xf] }
 0x7fd   :  { %1986 = vmatpush.bf16.msrb.mxu1 %v3726_v41  ;;  %v3658_v56 = vor.u32 %v4613_v16, %v3655_v4  ;;  %v4712_v41 = vld [vmem:[#allocation11 + $0x3ac] sm:$0xf]  ;;  %v3997_v4 = vld [vmem:[#allocation11 + $0x328] sm:$0xf] }
 0x7fe   :  { %v4066_v16 = vor.u32 %v4712_v41, %v4063_v42  ;;  %v4640_v40 = vld [vmem:[#allocation11 + $0x164] sm:$0xf0]  ;;  %v4632_v41 = vld [vmem:[#allocation11 + $0x12c] sm:$0xf] }
 0x7ff   :  { %2000 = vmatpush.bf16.msra.mxu2 %v3730_v44  ;;  %1973 = vmatpush.bf16.msra.mxu3 %v3658_v56  ;;  %v4054_v44 = vor.u32 %v4719_v37, %v4053_v36  ;;  %v3999_v56 = vld [vmem:[#allocation11 + $0x368] sm:$0xf0] }
 0x800   :  { %1955 = vmatpush.bf16.msrb.mxu0 %v3910_v62  ;;  %v4605_v62 = vld [vmem:[#allocation11 + $0x4c] sm:$0xf0]  ;;  %v3743_v42 = vld [vmem:[#allocation11 + $0x168] sm:$0xf0] }
 0x801   :  { %v3590_v0 = vor.u32 %v4605_v62, %v3589_v46  ;;  %1987 = vmatpush.bf16.msrb.mxu1 %v3662_v52  ;;  %v4002_v46 = vor.u32 %v4696_v55, %v3999_v56  ;;  %v4679_v62 = vld [vmem:[#allocation11 + $0x2a4] sm:$0xf]  ;;  %v4616_v55 = vld [vmem:[#allocation11 + $0xac] sm:$0xf] }
 0x802   :  { %v3679_v56 = vld [vmem:[#allocation11 + $0xe8] sm:$0xf0] }
 0x803   :  { %2001 = vmatpush.bf16.msra.mxu2 %v3666_v6  ;;  %1974 = vmatpush.bf16.msra.mxu3 %v3594_v5  ;;  %v3998_v6 = vor.u32 %v4704_v54, %v3997_v4  ;;  %v3677_v4 = vld [vmem:[#allocation11 + $0xa8] sm:$0xf] }
 0x804   :  { %1956 = vmatpush.bf16.msrb.mxu0 %v3846_v11  ;;  %v4624_v54 = vld [vmem:[#allocation11 + $0xe4] sm:$0xf0] }
 0x805   :  { %1988 = vmatpush.bf16.msrb.mxu1 %v3598_v7  ;;  %v3930_v7 = vor.u32 %v4679_v62, %v3927_v63  ;;  %v3678_v62 = vor.u32 %v4624_v54, %v3677_v4  ;;  %v3682_v63 = vor.u32 %v4616_v55, %v3679_v56  ;;  %v3885_v4 = vld [vmem:[#allocation11 + $0x238] sm:$0xf]  ;;  %v4666_v55 = vld [vmem:[#allocation11 + $0x23c] sm:$0xf] }
 0x806   :  { %v4674_v54 = vld [vmem:[#allocation11 + $0x274] sm:$0xf0]  ;;  %v3887_v56 = vld [vmem:[#allocation11 + $0x278] sm:$0xf0] }
 0x807   :  { %2002 = vmatpush.bf16.msra.mxu2 %v3602_v50 }
 0x808   :  { %1957 = vmatpush.bf16.msrb.mxu0 %v3782_v28 }
 0x80c   :  { %1958 = vmatpush.bf16.msrb.mxu0 %v3718_v38  ;;  %v4711_v38 = vld [vmem:[#allocation11 + $0x3a4] sm:$0xf] }
 0x810   :  { %1959 = vmatpush.bf16.msrb.mxu0 %v3654_v53  ;;  %v3991_v53 = vld [vmem:[#allocation11 + $0x360] sm:$0xf0] }
 0x814   :  { %1960 = vmatpush.bf16.msrb.mxu0 %v3590_v0  ;;  %v3933_v0 = vld [vmem:[#allocation11 + $0x2a8] sm:$0xf] }
 0x815   :  { %v3934_v50 = vor.u32 %v4688_v1, %v3933_v0  ;;  %v3613_v0 = vld [vmem:[#allocation11 + $0x28] sm:$0xf] }
 0x816   :  { %v4608_v1 = vld [vmem:[#allocation11 + $0x64] sm:$0xf0] }
 0x85c   :  { %v1055_v48 = vpop.xlane.xlu2 %1054 }
 0x85d   :  { %v1058_v47 = vmul.f32 %v1055_v48, %v5470_v51  ;;  %v4058_v48 = vor.u32 %v4711_v38, %v4055_v39  ;;  %v4631_v38 = vld [vmem:[#allocation11 + $0x124] sm:$0xf] }
 0x85e   :  { %v3735_v39 = vld [vmem:[#allocation11 + $0x160] sm:$0xf0] }
 0x85f   :  { %v1060_v61 = vadd.f32 1e-05, %v1058_v47  ;;  %v4695_v47 = vld [vmem:[#allocation11 + $0x324] sm:$0xf] }
 0x860   :  { %v3994_v58 = vor.u32 %v4695_v47, %v3991_v53  ;;  %v4615_v47 = vld [vmem:[#allocation11 + $0xa4] sm:$0xf] }
 0x861   :  { %4913 = vrsqrt.f32 %v1060_v61  ;;  %vm1068_vm4 = vweird.f32 %v1060_v61  ;;  %v3671_v53 = vld [vmem:[#allocation11 + $0xe0] sm:$0xf0] }
 0x864   :  { %v1057_v10 = vpop.xlane.xlu0 %1056 }
 0x865   :  { %v1059_v11 = vmul.f32 %v1057_v10, %v5470_v51  ;;  %v3938_v10 = vor.u32 %v4680_v2, %v3935_v3  ;;  %v4600_v2 = vld [vmem:[#allocation11 + $0x2c] sm:$0xf] }
 0x866   :  { %v3615_v3 = vld [vmem:[#allocation11 + $0x68] sm:$0xf0] }
 0x867   :  { %v4914_v12 = vpop.eup %4913  ;;  %v1061_v14 = vadd.f32 1e-05, %v1059_v11  ;;  %v4663_v11 = vld [vmem:[#allocation11 + $0x224] sm:$0xf] }
 0x868   :  { %v1063_v17 = vmul.f32 %v4914_v12, %v1060_v61  ;;  %vm1069_vm3 = vweird.f32 %v4914_v12  ;;  %v4687_v61 = vld [vmem:[#allocation11 + $0x2dc] sm:$0xf0] }
 0x869   :  { %4915 = vrsqrt.f32 %v1061_v14  ;;  %vm1070_vm5 = vmor %vm1068_vm4, %vm1069_vm3  ;;  %vm1078_vm7 = vweird.f32 %v1061_v14  ;;  %v3926_v5 = vor.u32 %v4687_v61, %v3925_v59  ;;  %v3674_v59 = vor.u32 %v4615_v47, %v3671_v53  ;;  %v4607_v61 = vld [vmem:[#allocation11 + $0x5c] sm:$0xf0]  ;;  %v4665_v47 = vld [vmem:[#allocation11 + $0x234] sm:$0xf] }
 0x86a   :  { %v1064_v13 = vmul.f32 %v4914_v12, %v1063_v17  ;;  %v4672_v17 = vld [vmem:[#allocation11 + $0x264] sm:$0xf0]  ;;  %v3879_v53 = vld [vmem:[#allocation11 + $0x270] sm:$0xf0] }
 0x86c   :  { %v1065_v19 = vmul.f32 0.5, %v1064_v13  ;;  %v4664_v13 = vld [vmem:[#allocation11 + $0x22c] sm:$0xf] }
 0x86e   :  { %v1066_v21 = vsub.f32 1.5, %v1065_v19  ;;  %v3871_v19 = vld [vmem:[#allocation11 + $0x268] sm:$0xf0] }
 0x86f   :  { %v4916_v23 = vpop.eup %4915 }
 0x870   :  { %v1067_v24 = vmul.f32 %v4914_v12, %v1066_v21  ;;  %v1073_v25 = vmul.f32 %v4916_v23, %v1061_v14  ;;  %vm1079_vm6 = vweird.f32 %v4916_v23  ;;  %v3869_v14 = vld [vmem:[#allocation11 + $0x228] sm:$0xf]  ;;  %v3862_v21 = vor.u32 %v4671_v9, %v3861_v8  ;;  %v4713_v8 = vld [vmem:[#allocation11 + $0x3b4] sm:$0xf] }
 0x871   :  { %vm1080_vm8 = vmor %vm1078_vm7, %vm1079_vm6  ;;  %v4071_v9 = vld [vmem:[#allocation11 + $0x3f0] sm:$0xf0] }
 0x872   :  { %v1074_v26 = vmul.f32 %v4916_v23, %v1073_v25  ;;  %v1071_v27 = vsel %vm1070_vm5, %v4914_v12, %v1067_v24  ;;  %v3863_v12 = vld [vmem:[#allocation11 + $0x260] sm:$0xf0]  ;;  %v3797_v24 = vld [vmem:[#allocation11 + $0x1a0] sm:$0xf] }
 0x873   :  { %v1082_v31 = vmul.f32 %v1071_v27, %v5474_v57  ;;  %v4655_v25 = vld [vmem:[#allocation11 + $0x1dc] sm:$0xf0]  ;;  %v3874_v27 = vor.u32 %v4664_v13, %v3871_v19  ;;  %v3614_v13 = vor.u32 %v4608_v1, %v3613_v0  ;;  %v3618_v19 = vor.u32 %v4600_v2, %v3615_v3  ;;  %v3821_v0 = vld [vmem:[#allocation11 + $0x1b8] sm:$0xf]  ;;  %v4650_v2 = vld [vmem:[#allocation11 + $0x1bc] sm:$0xf] }
 0x874   :  { %v1075_v28 = vmul.f32 0.5, %v1074_v26  ;;  %v3870_v26 = vor.u32 %v4672_v17, %v3869_v14  ;;  %v4714_v14 = vld [vmem:[#allocation11 + $0x3bc] sm:$0xf]  ;;  %v4658_v1 = vld [vmem:[#allocation11 + $0x1f4] sm:$0xf0] }
 0x875   :  { %v1087_v22 = vmul.f32 %v4873_v30, %v1082_v31  ;;  %v4656_v31 = vld [vmem:[#allocation11 + $0x1e4] sm:$0xf0]  ;;  %v4079_v17 = vld [vmem:[#allocation11 + $0x3f8] sm:$0xf0] }
 0x876   :  { %v1076_v29 = vsub.f32 1.5, %v1075_v28  ;;  %v4647_v28 = vld [vmem:[#allocation11 + $0x1a4] sm:$0xf]  ;;  %v3823_v3 = vld [vmem:[#allocation11 + $0x1f8] sm:$0xf0] }
 0x877   :  { %v5494_v20 = vadd.f32 %v4874_v33, %v1087_v22 }
 0x878   :  { %v1077_v15 = vmul.f32 %v4916_v23, %v1076_v29  ;;  %v3799_v29 = vld [vmem:[#allocation11 + $0x1e0] sm:$0xf0] }
 0x879   :  { %v3802_v22 = vor.u32 %v4647_v28, %v3799_v29  ;;  %v4697_v28 = vld [vmem:[#allocation11 + $0x334] sm:$0xf] }
 0x87a   :  { %v1081_v32 = vsel %vm1080_vm8, %v4916_v23, %v1077_v15  ;;  %v3866_v23 = vor.u32 %v4663_v11, %v3863_v12  ;;  %v4648_v15 = vld [vmem:[#allocation11 + $0x1ac] sm:$0xf]  ;;  %v4722_v12 = vld [vmem:[#allocation11 + $0x3f4] sm:$0xf0]  ;;  %v4007_v29 = vld [vmem:[#allocation11 + $0x370] sm:$0xf0] }
 0x87b   :  { %v1083_v34 = vmul.f32 %v1081_v32, %v5480_v60  ;;  %v3989_v60 = vld [vmem:[#allocation11 + $0x320] sm:$0xf]  ;;  %v3807_v32 = vld [vmem:[#allocation11 + $0x1e8] sm:$0xf0] }
 0x87c   :  { %v3990_v52 = vor.u32 %v4703_v49, %v3989_v60  ;;  %v3810_v37 = vor.u32 %v4648_v15, %v3807_v32  ;;  %v3669_v60 = vld [vmem:[#allocation11 + $0xa0] sm:$0xf]  ;;  %v4698_v15 = vld [vmem:[#allocation11 + $0x33c] sm:$0xf] }
 0x87d   :  { %v1088_v35 = vmul.f32 %v4873_v30, %v1083_v34  ;;  %v3805_v30 = vld [vmem:[#allocation11 + $0x1a8] sm:$0xf]  ;;  %v3733_v34 = vld [vmem:[#allocation11 + $0x120] sm:$0xf]  ;;  %v4015_v32 = vld [vmem:[#allocation11 + $0x378] sm:$0xf0] }
 0x87e   :  { %v3806_v36 = vor.u32 %v4656_v31, %v3805_v30  ;;  %v4623_v49 = vld [vmem:[#allocation11 + $0xdc] sm:$0xf0]  ;;  %v4013_v30 = vld [vmem:[#allocation11 + $0x338] sm:$0xf] }
 0x87f   :  { %v5496_v57 = vadd.f32 %v4874_v33, %v1088_v35  ;;  %v3798_v33 = vor.u32 %v4655_v25, %v3797_v24  ;;  %v4639_v35 = vld [vmem:[#allocation11 + $0x15c] sm:$0xf0]  ;;  %v4005_v24 = vld [vmem:[#allocation11 + $0x330] sm:$0xf]  ;;  %v4706_v31 = vld [vmem:[#allocation11 + $0x374] sm:$0xf0] }
 0x880   :  { %v4705_v25 = vld [vmem:[#allocation11 + $0x36c] sm:$0xf0] }
 0x881   :  { %v5500_v43 = vpack.c.bf16 %v5496_v57, %v5494_v20 }
 0x883   :  { %1905 = vmatmul.bf16.vlgmr.msra.gmra.mxu0 %v5500_v43  ;;  %1919 = vmatmul.bf16.vlgmr.msrb.gmra.mxu3 %v5500_v43 }
 0x884   :  { %1933 = vmatmul.bf16.vlgmr.msra.gmra.mxu1 %v5500_v43  ;;  %1947 = vmatmul.bf16.vlgmr.msrb.gmra.mxu2 %v5500_v43 }
 0x885   :  { %2009 = vmatpush.bf16.msra.mxu0 %v4054_v44  ;;  %2023 = vmatpush.bf16.msrb.mxu3 %v4058_v48  ;;  %v3734_v44 = vor.u32 %v4639_v35, %v3733_v34  ;;  %v3738_v48 = vor.u32 %v4631_v38, %v3735_v39  ;;  %v3941_v34 = vld [vmem:[#allocation11 + $0x2b0] sm:$0xf]  ;;  %v4681_v38 = vld [vmem:[#allocation11 + $0x2b4] sm:$0xf] }
 0x886   :  { %2037 = vmatpush.bf16.msra.mxu1 %v4062_v45  ;;  %2051 = vmatpush.bf16.msrb.mxu2 %v4066_v16  ;;  %v3742_v45 = vor.u32 %v4640_v40, %v3741_v18  ;;  %v3746_v16 = vor.u32 %v4632_v41, %v3743_v42  ;;  %v4689_v35 = vld [vmem:[#allocation11 + $0x2ec] sm:$0xf0]  ;;  %v3943_v39 = vld [vmem:[#allocation11 + $0x2f0] sm:$0xf0]  ;;  %v3949_v18 = vld [vmem:[#allocation11 + $0x2b8] sm:$0xf] }
 0x887   :  { %v4690_v40 = vld [vmem:[#allocation11 + $0x2f4] sm:$0xf0]  ;;  %v4682_v41 = vld [vmem:[#allocation11 + $0x2bc] sm:$0xf] }
 0x888   :  { %v3951_v42 = vld [vmem:[#allocation11 + $0x2f8] sm:$0xf0] }
 0x889   :  { %2010 = vmatpush.bf16.msra.mxu0 %v3990_v52  ;;  %2024 = vmatpush.bf16.msrb.mxu3 %v3994_v58  ;;  %v3605_v52 = vld [vmem:[#allocation11 + $0x20] sm:$0xf]  ;;  %v3670_v58 = vor.u32 %v4623_v49, %v3669_v60  ;;  %v3877_v60 = vld [vmem:[#allocation11 + $0x230] sm:$0xf] }
 0x88a   :  { %2038 = vmatpush.bf16.msra.mxu1 %v3998_v6  ;;  %2052 = vmatpush.bf16.msrb.mxu2 %v4002_v46  ;;  %v4599_v6 = vld [vmem:[#allocation11 + $0x24] sm:$0xf]  ;;  %v4673_v49 = vld [vmem:[#allocation11 + $0x26c] sm:$0xf0] }
 0x88b   :  { %v3607_v46 = vld [vmem:[#allocation11 + $0x60] sm:$0xf0] }
 0x88c   :  { %v3610_v11 = vor.u32 %v4599_v6, %v3607_v46  ;;  %v3886_v6 = vor.u32 %v4674_v54, %v3885_v4  ;;  %v3890_v46 = vor.u32 %v4666_v55, %v3887_v56  ;;  %v4729_v4 = vld [vmem:[#allocation14 + $0x30] sm:$0xff] }
 0x88d   :  { %2011 = vmatpush.bf16.msra.mxu0 %v3926_v5  ;;  %2025 = vmatpush.bf16.msrb.mxu3 %v3930_v7  ;;  %v4069_v5 = vld [vmem:[#allocation11 + $0x3b0] sm:$0xf]  ;;  %v4745_v54 = vld [vmem:[#allocation14 + $0xb0] sm:$0xff] }
 0x88e   :  { %2039 = vmatpush.bf16.msra.mxu1 %v3934_v50  ;;  %2053 = vmatpush.bf16.msrb.mxu2 %v3938_v10  ;;  %v4721_v7 = vld [vmem:[#allocation11 + $0x3ec] sm:$0xf0]  ;;  %v4077_v50 = vld [vmem:[#allocation11 + $0x3b8] sm:$0xf]  ;;  %v3606_v10 = vor.u32 %v4607_v61, %v3605_v52  ;;  %v3878_v52 = vor.u32 %v4673_v49, %v3877_v60  ;;  %v4737_v55 = vld [vmem:[#allocation14 + $0x70] sm:$0xff] }
 0x88f   :  { %v4657_v61 = vld [vmem:[#allocation11 + $0x1ec] sm:$0xf0]  ;;  %v4753_v56 = vld [vmem:[#allocation14 + $0xf0] sm:$0xff] }
 0x891   :  { %2012 = vmatpush.bf16.msra.mxu0 %v3862_v21  ;;  %2026 = vmatpush.bf16.msrb.mxu3 %v3866_v23  ;;  %v4070_v21 = vor.u32 %v4721_v7, %v4069_v5  ;;  %v4074_v23 = vor.u32 %v4713_v8, %v4071_v9  ;;  %v3749_v8 = vld [vmem:[#allocation11 + $0x130] sm:$0xf] }
 0x892   :  { %2040 = vmatpush.bf16.msra.mxu1 %v3870_v26  ;;  %2054 = vmatpush.bf16.msrb.mxu2 %v3874_v27  ;;  %v4078_v26 = vor.u32 %v4722_v12, %v4077_v50  ;;  %v4082_v27 = vor.u32 %v4714_v14, %v4079_v17  ;;  %v4641_v9 = vld [vmem:[#allocation11 + $0x16c] sm:$0xf0]  ;;  %v3822_v50 = vor.u32 %v4658_v1, %v3821_v0  ;;  %v3751_v12 = vld [vmem:[#allocation11 + $0x170] sm:$0xf0]  ;;  %v3757_v14 = vld [vmem:[#allocation11 + $0x138] sm:$0xf] }
 0x893   :  { %1961 = vmatmul.bf16.vlgmr.msrb.gmra.mxu0 %v5500_v43  ;;  %1975 = vmatmul.bf16.vlgmr.msra.gmra.mxu3 %v5500_v43  ;;  %v4642_v17 = vld [vmem:[#allocation11 + $0x174] sm:$0xf0]  ;;  %v4742_v0 = vld [vmem:[#allocation14 + $0x98] sm:$0xff] }
 0x894   :  { %1989 = vmatmul.bf16.vlgmr.msrb.gmra.mxu1 %v5500_v43  ;;  %2003 = vmatmul.bf16.vlgmr.msra.gmra.mxu2 %v5500_v43  ;;  %v4734_v1 = vld [vmem:[#allocation14 + $0x58] sm:$0xff] }
 0x895   :  { %2013 = vmatpush.bf16.msra.mxu0 %v3798_v33  ;;  %2027 = vmatpush.bf16.msrb.mxu3 %v3802_v22  ;;  %v4006_v33 = vor.u32 %v4705_v25, %v4005_v24  ;;  %v4010_v22 = vor.u32 %v4697_v28, %v4007_v29  ;;  %v3685_v24 = vld [vmem:[#allocation11 + $0xb0] sm:$0xf]  ;;  %v4617_v28 = vld [vmem:[#allocation11 + $0xb4] sm:$0xf] }
 0x896   :  { %2041 = vmatpush.bf16.msra.mxu1 %v3806_v36  ;;  %2055 = vmatpush.bf16.msrb.mxu2 %v3810_v37  ;;  %v4014_v36 = vor.u32 %v4706_v31, %v4013_v30  ;;  %v4018_v37 = vor.u32 %v4698_v15, %v4015_v32  ;;  %v4625_v25 = vld [vmem:[#allocation11 + $0xec] sm:$0xf0]  ;;  %v3687_v29 = vld [vmem:[#allocation11 + $0xf0] sm:$0xf0]  ;;  %v3693_v30 = vld [vmem:[#allocation11 + $0xb8] sm:$0xf] }
 0x897   :  { %v4626_v31 = vld [vmem:[#allocation11 + $0xf4] sm:$0xf0]  ;;  %v4618_v15 = vld [vmem:[#allocation11 + $0xbc] sm:$0xf] }
 0x898   :  { %v3695_v32 = vld [vmem:[#allocation11 + $0xf8] sm:$0xf0] }
 0x899   :  { %2014 = vmatpush.bf16.msra.mxu0 %v3734_v44  ;;  %2028 = vmatpush.bf16.msrb.mxu3 %v3738_v48  ;;  %v3942_v44 = vor.u32 %v4689_v35, %v3941_v34  ;;  %v3946_v48 = vor.u32 %v4681_v38, %v3943_v39  ;;  %v3621_v34 = vld [vmem:[#allocation11 + $0x30] sm:$0xf]  ;;  %v4601_v38 = vld [vmem:[#allocation11 + $0x34] sm:$0xf] }
 0x89a   :  { %2042 = vmatpush.bf16.msra.mxu1 %v3742_v45  ;;  %2056 = vmatpush.bf16.msrb.mxu2 %v3746_v16  ;;  %v3950_v45 = vor.u32 %v4690_v40, %v3949_v18  ;;  %v3954_v16 = vor.u32 %v4682_v41, %v3951_v42  ;;  %v4609_v35 = vld [vmem:[#allocation11 + $0x6c] sm:$0xf0]  ;;  %v3623_v39 = vld [vmem:[#allocation11 + $0x70] sm:$0xf0]  ;;  %v3629_v18 = vld [vmem:[#allocation11 + $0x38] sm:$0xf] }
 0x89b   :  { %v4610_v40 = vld [vmem:[#allocation11 + $0x74] sm:$0xf0]  ;;  %v4602_v41 = vld [vmem:[#allocation11 + $0x3c] sm:$0xf] }
 0x89c   :  { %v3631_v42 = vld [vmem:[#allocation11 + $0x78] sm:$0xf0]  ;;  %v3630_v60 = vor.u32 %v4610_v40, %v3629_v18  ;;  %v4773_v18 = vld [vmem:[#allocation14 + $0x190] sm:$0xff] }
 0x89d   :  { %2015 = vmatpush.bf16.msra.mxu0 %v3670_v58  ;;  %2029 = vmatpush.bf16.msrb.mxu3 %v3674_v59  ;;  %v3882_v58 = vor.u32 %v4665_v47, %v3879_v53  ;;  %v3813_v59 = vld [vmem:[#allocation11 + $0x1b0] sm:$0xf]  ;;  %v3634_v49 = vor.u32 %v4602_v41, %v3631_v42  ;;  %v4738_v47 = vld [vmem:[#allocation14 + $0x78] sm:$0xff]  ;;  %v4765_v40 = vld [vmem:[#allocation14 + $0x150] sm:$0xff] }
 0x89e   :  { %2043 = vmatpush.bf16.msra.mxu1 %v3678_v62  ;;  %2057 = vmatpush.bf16.msrb.mxu2 %v3682_v63  ;;  %v4649_v62 = vld [vmem:[#allocation11 + $0x1b4] sm:$0xf]  ;;  %v3814_v5 = vor.u32 %v4657_v61, %v3813_v59  ;;  %v4754_v53 = vld [vmem:[#allocation14 + $0xf8] sm:$0xff]  ;;  %v4736_v59 = vld [vmem:[#allocation14 + $0x68] sm:$0xff] }
 0x89f   :  { %v3815_v63 = vld [vmem:[#allocation11 + $0x1f0] sm:$0xf0]  ;;  %v4752_v61 = vld [vmem:[#allocation14 + $0xe8] sm:$0xff]  ;;  %v4781_v41 = vld [vmem:[#allocation14 + $0x1d0] sm:$0xff] }
 0x8a0   :  { %v3818_v7 = vor.u32 %v4649_v62, %v3815_v63  ;;  %v4735_v62 = vld [vmem:[#allocation14 + $0x60] sm:$0xff]  ;;  %v4726_v63 = vld [vmem:[#allocation14 + $0x18] sm:$0xff]  ;;  %v4756_v42 = vld [vmem:[#allocation14 + $0x108] sm:$0xff] }
 0x8a1   :  { %2016 = vmatpush.bf16.msra.mxu0 %v3606_v10  ;;  %2030 = vmatpush.bf16.msrb.mxu3 %v3610_v11  ;;  %v3826_v10 = vor.u32 %v4650_v2, %v3823_v3  ;;  %v4633_v11 = vld [vmem:[#allocation11 + $0x134] sm:$0xf]  ;;  %v4750_v2 = vld [vmem:[#allocation14 + $0xd8] sm:$0xff]  ;;  %v4725_v3 = vld [vmem:[#allocation14 + $0x10] sm:$0xff] }
 0x8a2   :  { %2044 = vmatpush.bf16.msra.mxu1 %v3614_v13  ;;  %2058 = vmatpush.bf16.msrb.mxu2 %v3618_v19  ;;  %v4634_v13 = vld [vmem:[#allocation11 + $0x13c] sm:$0xf] }
 0x8a3   :  { %v3759_v19 = vld [vmem:[#allocation11 + $0x178] sm:$0xf0] }
 0x8a4   :  { %2017 = vmatmul.bf16.vlgmr.msra.gmra.mxu0 %v5500_v43  ;;  %2031 = vmatmul.bf16.vlgmr.msrb.gmra.mxu3 %v5500_v43 }
 0x8a5   :  { %2065 = vmatpush.bf16.msrb.mxu0 %v4070_v21  ;;  %2079 = vmatpush.bf16.msra.mxu3 %v4074_v23  ;;  %v3750_v21 = vor.u32 %v4641_v9, %v3749_v8  ;;  %v3754_v23 = vor.u32 %v4633_v11, %v3751_v12  ;;  %v4749_v8 = vld [vmem:[#allocation14 + $0xd0] sm:$0xff]  ;;  %v4724_v9 = vld [vmem:[#allocation14 + $0x8] sm:$0xff]  ;;  %v4723_v12 = vld [vmem:[#allocation14] sm:$0xff] }
 0x8a6   :  { %2093 = vmatpush.bf16.msrb.mxu1 %v4078_v26  ;;  %2107 = vmatpush.bf16.msra.mxu2 %v4082_v27  ;;  %v3758_v26 = vor.u32 %v4642_v17, %v3757_v14  ;;  %v3762_v27 = vor.u32 %v4634_v13, %v3759_v19  ;;  %v4748_v11 = vld [vmem:[#allocation14 + $0xc8] sm:$0xff]  ;;  %v4739_v14 = vld [vmem:[#allocation14 + $0x80] sm:$0xff]  ;;  %v4762_v17 = vld [vmem:[#allocation14 + $0x138] sm:$0xff] }
 0x8a7   :  { %2045 = vmatmul.bf16.vlgmr.msra.gmra.mxu1 %v5500_v43  ;;  %2059 = vmatmul.bf16.vlgmr.msrb.gmra.mxu2 %v5500_v43  ;;  %v4778_v13 = vld [vmem:[#allocation14 + $0x1b8] sm:$0xff]  ;;  %v4731_v19 = vld [vmem:[#allocation14 + $0x40] sm:$0xff] }
 0x8a9   :  { %2066 = vmatpush.bf16.msrb.mxu0 %v4006_v33  ;;  %2080 = vmatpush.bf16.msra.mxu3 %v4010_v22  ;;  %v3686_v33 = vor.u32 %v4625_v25, %v3685_v24  ;;  %v3690_v22 = vor.u32 %v4617_v28, %v3687_v29  ;;  %v4786_v24 = vld [vmem:[#allocation14 + $0x1f8] sm:$0xff]  ;;  %v4761_v25 = vld [vmem:[#allocation14 + $0x130] sm:$0xff]  ;;  %v4760_v29 = vld [vmem:[#allocation14 + $0x128] sm:$0xff] }
 0x8aa   :  { %2094 = vmatpush.bf16.msrb.mxu1 %v4014_v36  ;;  %2108 = vmatpush.bf16.msra.mxu2 %v4018_v37  ;;  %v3694_v36 = vor.u32 %v4626_v31, %v3693_v30  ;;  %v3698_v37 = vor.u32 %v4618_v15, %v3695_v32  ;;  %v4785_v28 = vld [vmem:[#allocation14 + $0x1f0] sm:$0xff]  ;;  %v4776_v30 = vld [vmem:[#allocation14 + $0x1a8] sm:$0xff]  ;;  %v4759_v32 = vld [vmem:[#allocation14 + $0x120] sm:$0xff] }
 0x8ab   :  { %v4768_v31 = vld [vmem:[#allocation14 + $0x168] sm:$0xff] }
 0x8ac   :  { %v4784_v15 = vld [vmem:[#allocation14 + $0x1e8] sm:$0xff] }
 0x8ad   :  { %2067 = vmatpush.bf16.msrb.mxu0 %v3942_v44  ;;  %2081 = vmatpush.bf16.msra.mxu3 %v3946_v48  ;;  %v3622_v44 = vor.u32 %v4609_v35, %v3621_v34  ;;  %v3626_v48 = vor.u32 %v4601_v38, %v3623_v39  ;;  %v4783_v34 = vld [vmem:[#allocation14 + $0x1e0] sm:$0xff]  ;;  %v4758_v35 = vld [vmem:[#allocation14 + $0x118] sm:$0xff]  ;;  %v4757_v39 = vld [vmem:[#allocation14 + $0x110] sm:$0xff] }
 0x8ae   :  { %2095 = vmatpush.bf16.msrb.mxu1 %v3950_v45  ;;  %2109 = vmatpush.bf16.msra.mxu2 %v3954_v16  ;;  %v4730_v45 = vld [vmem:[#allocation14 + $0x38] sm:$0xff] }
 0x8af   :  { %v4746_v16 = vld [vmem:[#allocation14 + $0xb8] sm:$0xff] }
 0x8b0   :  { %v4782_v38 = vld [vmem:[#allocation14 + $0x1d8] sm:$0xff] }
 0x8b1   :  { %2068 = vmatpush.bf16.msrb.mxu0 %v3878_v52  ;;  %2082 = vmatpush.bf16.msra.mxu3 %v3882_v58  ;;  %v4728_v52 = vld [vmem:[#allocation14 + $0x28] sm:$0xff] }
 0x8b2   :  { %2096 = vmatpush.bf16.msrb.mxu1 %v3886_v6  ;;  %2110 = vmatpush.bf16.msra.mxu2 %v3890_v46  ;;  %v4744_v58 = vld [vmem:[#allocation14 + $0xa8] sm:$0xff]  ;;  %v4727_v6 = vld [vmem:[#allocation14 + $0x20] sm:$0xff] }
 0x8b3   :  { %v4743_v46 = vld [vmem:[#allocation14 + $0xa0] sm:$0xff] }
 0x8b5   :  { %2069 = vmatpush.bf16.msrb.mxu0 %v3814_v5  ;;  %2083 = vmatpush.bf16.msra.mxu3 %v3818_v7  ;;  %v4741_v5 = vld [vmem:[#allocation14 + $0x90] sm:$0xff] }
 0x8b6   :  { %2097 = vmatpush.bf16.msrb.mxu1 %v3822_v50  ;;  %2111 = vmatpush.bf16.msra.mxu2 %v3826_v10  ;;  %v4733_v7 = vld [vmem:[#allocation14 + $0x50] sm:$0xff]  ;;  %v4740_v50 = vld [vmem:[#allocation14 + $0x88] sm:$0xff] }
 0x8b7   :  { %v4732_v10 = vld [vmem:[#allocation14 + $0x48] sm:$0xff] }
 0x8b9   :  { %2070 = vmatpush.bf16.msrb.mxu0 %v3750_v21  ;;  %2084 = vmatpush.bf16.msra.mxu3 %v3754_v23  ;;  %v4747_v21 = vld [vmem:[#allocation14 + $0xc0] sm:$0xff]  ;;  %v4770_v23 = vld [vmem:[#allocation14 + $0x178] sm:$0xff] }
 0x8ba   :  { %2098 = vmatpush.bf16.msrb.mxu1 %v3758_v26  ;;  %2112 = vmatpush.bf16.msra.mxu2 %v3762_v27  ;;  %v4777_v26 = vld [vmem:[#allocation14 + $0x1b0] sm:$0xff] }
 0x8bb   :  { %v4769_v27 = vld [vmem:[#allocation14 + $0x170] sm:$0xff] }
 0x8bd   :  { %2071 = vmatpush.bf16.msrb.mxu0 %v3686_v33  ;;  %2085 = vmatpush.bf16.msra.mxu3 %v3690_v22  ;;  %v4775_v33 = vld [vmem:[#allocation14 + $0x1a0] sm:$0xff] }
 0x8be   :  { %2099 = vmatpush.bf16.msrb.mxu1 %v3694_v36  ;;  %2113 = vmatpush.bf16.msra.mxu2 %v3698_v37  ;;  %v4767_v22 = vld [vmem:[#allocation14 + $0x160] sm:$0xff]  ;;  %v4774_v36 = vld [vmem:[#allocation14 + $0x198] sm:$0xff] }
 0x8bf   :  { %v4766_v37 = vld [vmem:[#allocation14 + $0x158] sm:$0xff] }
 0x8c1   :  { %2072 = vmatpush.bf16.msrb.mxu0 %v3622_v44  ;;  %2086 = vmatpush.bf16.msra.mxu3 %v3626_v48  ;;  %v4772_v44 = vld [vmem:[#allocation14 + $0x188] sm:$0xff] }
 0x8c2   :  { %2100 = vmatpush.bf16.msrb.mxu1 %v3630_v60  ;;  %2114 = vmatpush.bf16.msra.mxu2 %v3634_v49  ;;  %v4764_v48 = vld [vmem:[#allocation14 + $0x148] sm:$0xff]  ;;  %v4755_v49 = vld [vmem:[#allocation14 + $0x100] sm:$0xff] }
 0x8c3   :  { %v4780_v60 = vld [vmem:[#allocation14 + $0x1c8] sm:$0xff] }
 0x8c4   :  { %2073 = vmatmul.bf16.vlgmr.msrb.gmra.mxu0 %v5500_v43  ;;  %2087 = vmatmul.bf16.vlgmr.msra.gmra.mxu3 %v5500_v43 }
 0x8c5   :  { %3196 = vmatpush.bf16.msra.mxu0 %v4730_v45  ;;  %2101 = vmatmul.bf16.vlgmr.msrb.gmra.mxu1 %v5500_v43  ;;  %v4771_v45 = vld [vmem:[#allocation14 + $0x180] sm:$0xff] }
 0x8c6   :  { %3224 = vmatpush.bf16.msra.mxu1 %v4746_v16  ;;  %2115 = vmatmul.bf16.vlgmr.msra.gmra.mxu2 %v5500_v43  ;;  %v4751_v43 = vld [vmem:[#allocation14 + $0xe0] sm:$0xff] }
 0x8c7   :  { %3210 = vmatpush.bf16.msrb.mxu3 %v4738_v47  ;;  %3238 = vmatpush.bf16.msrb.mxu2 %v4754_v53  ;;  %v4763_v16 = vld [vmem:[#allocation14 + $0x140] sm:$0xff]  ;;  %v5518_v53 = vld [vmem:[#allocation13] sm:$0xff] }
 0x8c8   :  { %v4779_v47 = vld [vmem:[#allocation14 + $0x1c0] sm:$0xff] }
 0x8c9   :  { %3197 = vmatpush.bf16.msra.mxu0 %v4729_v4 }
 0x8ca   :  { %3225 = vmatpush.bf16.msra.mxu1 %v4745_v54 }
 0x8cb   :  { %3211 = vmatpush.bf16.msrb.mxu3 %v4737_v55  ;;  %3239 = vmatpush.bf16.msrb.mxu2 %v4753_v56  ;;  %v1225_v55 = vperm.slane %v5518_v53, 0  ;;  %v1227_v56 = vperm.slane %v5518_v53, 2 }
 0x8cd   :  { %3198 = vmatpush.bf16.msra.mxu0 %v4728_v52 }
 0x8ce   :  { %3226 = vmatpush.bf16.msra.mxu1 %v4744_v58 }
 0x8cf   :  { %3212 = vmatpush.bf16.msrb.mxu3 %v4736_v59  ;;  %3240 = vmatpush.bf16.msrb.mxu2 %v4752_v61 }
 0x8d1   :  { %3199 = vmatpush.bf16.msra.mxu0 %v4727_v6 }
 0x8d2   :  { %3227 = vmatpush.bf16.msra.mxu1 %v4743_v46  ;;  %v1226_v46 = vperm.slane %v5518_v53, 1 }
 0x8d3   :  { %3213 = vmatpush.bf16.msrb.mxu3 %v4735_v62  ;;  %3241 = vmatpush.bf16.msrb.mxu2 %v4751_v43 }
 0x8d5   :  { %3200 = vmatpush.bf16.msra.mxu0 %v4726_v63  ;;  %v1228_v63 = vperm.slane %v5518_v53, 3 }
 0x8d6   :  { %3228 = vmatpush.bf16.msra.mxu1 %v4742_v0 }
 0x8d7   :  { %3214 = vmatpush.bf16.msrb.mxu3 %v4734_v1  ;;  %3242 = vmatpush.bf16.msrb.mxu2 %v4750_v2 }
 0x8d9   :  { %3201 = vmatpush.bf16.msra.mxu0 %v4725_v3 }
 0x8da   :  { %3229 = vmatpush.bf16.msra.mxu1 %v4741_v5 }
 0x8db   :  { %3215 = vmatpush.bf16.msrb.mxu3 %v4733_v7  ;;  %3243 = vmatpush.bf16.msrb.mxu2 %v4749_v8  ;;  %v4794_v7 = vld [vmem:[#allocation14 + $0x238] sm:$0xff] }
 0x8dd   :  { %3202 = vmatpush.bf16.msra.mxu0 %v4724_v9 }
 0x8de   :  { %3230 = vmatpush.bf16.msra.mxu1 %v4740_v50  ;;  %v4810_v50 = vld [vmem:[#allocation14 + $0x2b8] sm:$0xff] }
 0x8df   :  { %3216 = vmatpush.bf16.msrb.mxu3 %v4732_v10  ;;  %3244 = vmatpush.bf16.msrb.mxu2 %v4748_v11 }
 0x8e1   :  { %3203 = vmatpush.bf16.msra.mxu0 %v4723_v12 }
 0x8e2   :  { %3231 = vmatpush.bf16.msra.mxu1 %v4739_v14 }
 0x8e3   :  { %3217 = vmatpush.bf16.msrb.mxu3 %v4731_v19  ;;  %3245 = vmatpush.bf16.msrb.mxu2 %v4747_v21  ;;  %v4793_v21 = vld [vmem:[#allocation14 + $0x230] sm:$0xff] }
 0x8e5   :  { %3252 = vmatpush.bf16.msrb.mxu0 %v4762_v17 }
 0x8e6   :  { %3280 = vmatpush.bf16.msrb.mxu1 %v4778_v13 }
 0x8e7   :  { %3266 = vmatpush.bf16.msra.mxu3 %v4770_v23  ;;  %3294 = vmatpush.bf16.msra.mxu2 %v4786_v24 }
 0x8e9   :  { %3253 = vmatpush.bf16.msrb.mxu0 %v4761_v25 }
 0x8ea   :  { %3281 = vmatpush.bf16.msrb.mxu1 %v4777_v26  ;;  %v4809_v26 = vld [vmem:[#allocation14 + $0x2b0] sm:$0xff] }
 0x8eb   :  { %3267 = vmatpush.bf16.msra.mxu3 %v4769_v27  ;;  %3295 = vmatpush.bf16.msra.mxu2 %v4785_v28 }
 0x8ed   :  { %3254 = vmatpush.bf16.msrb.mxu0 %v4760_v29  ;;  %v4802_v29 = vld [vmem:[#allocation14 + $0x278] sm:$0xff] }
 0x8ee   :  { %3282 = vmatpush.bf16.msrb.mxu1 %v4776_v30 }
 0x8ef   :  { %3268 = vmatpush.bf16.msra.mxu3 %v4768_v31  ;;  %3296 = vmatpush.bf16.msra.mxu2 %v4784_v15  ;;  %v1229_v31 = vperm.slane %v5518_v53, 4  ;;  %v4818_v15 = vld [vmem:[#allocation14 + $0x2f8] sm:$0xff] }
 0x8f1   :  { %3255 = vmatpush.bf16.msrb.mxu0 %v4759_v32 }
 0x8f2   :  { %3283 = vmatpush.bf16.msrb.mxu1 %v4775_v33  ;;  %v1231_v33 = vperm.slane %v5518_v53, 6 }
 0x8f3   :  { %3269 = vmatpush.bf16.msra.mxu3 %v4767_v22  ;;  %3297 = vmatpush.bf16.msra.mxu2 %v4783_v34  ;;  %v4792_v22 = vld [vmem:[#allocation14 + $0x228] sm:$0xff] }
 0x8f4   :  { %v4808_v34 = vld [vmem:[#allocation14 + $0x2a8] sm:$0xff] }
 0x8f5   :  { %3256 = vmatpush.bf16.msrb.mxu0 %v4758_v35 }
 0x8f6   :  { %3284 = vmatpush.bf16.msrb.mxu1 %v4774_v36  ;;  %v4801_v36 = vld [vmem:[#allocation14 + $0x270] sm:$0xff] }
 0x8f7   :  { %3270 = vmatpush.bf16.msra.mxu3 %v4766_v37  ;;  %3298 = vmatpush.bf16.msra.mxu2 %v4782_v38 }
 0x8f9   :  { %3257 = vmatpush.bf16.msrb.mxu0 %v4757_v39  ;;  %v4817_v39 = vld [vmem:[#allocation14 + $0x2f0] sm:$0xff] }
 0x8fa   :  { %3285 = vmatpush.bf16.msrb.mxu1 %v4773_v18 }
 0x8fb   :  { %3271 = vmatpush.bf16.msra.mxu3 %v4765_v40  ;;  %3299 = vmatpush.bf16.msra.mxu2 %v4781_v41  ;;  %v4791_v41 = vld [vmem:[#allocation14 + $0x220] sm:$0xff] }
 0x8fd   :  { %3258 = vmatpush.bf16.msrb.mxu0 %v4756_v42  ;;  %v1230_v42 = vperm.slane %v5518_v53, 5 }
 0x8fe   :  { %3286 = vmatpush.bf16.msrb.mxu1 %v4772_v44 }
 0x8ff   :  { %3272 = vmatpush.bf16.msra.mxu3 %v4764_v48  ;;  %3300 = vmatpush.bf16.msra.mxu2 %v4780_v60  ;;  %v4807_v60 = vld [vmem:[#allocation14 + $0x2a0] sm:$0xff] }
 0x900   :  { %v1906_v4 = vpop.f32.mrf.mxu0 }
 0x901   :  { %3259 = vmatpush.bf16.msrb.mxu0 %v4755_v49  ;;  %v1934_v54 = vpop.f32.mrf.mxu1  ;;  %v1907_v58 = vadd.f32 %v1906_v4, %v1225_v55  ;;  %v1232_v49 = vperm.slane %v5518_v53, 7  ;;  %v4799_v53 = vld [vmem:[#allocation14 + $0x260] sm:$0xff] }
 0x902   :  { %3287 = vmatpush.bf16.msrb.mxu1 %v4771_v45  ;;  %v1935_v61 = vadd.f32 %v1934_v54, %v1227_v56  ;;  %v4816_v54 = vld [vmem:[#allocation14 + $0x2e8] sm:$0xff] }
 0x903   :  { %3273 = vmatpush.bf16.msra.mxu3 %v4763_v16  ;;  %3301 = vmatpush.bf16.msra.mxu2 %v4779_v47  ;;  %v2121_v1 = vmax.f32 %v1907_v58, 0.0  ;;  %v4800_v16 = vld [vmem:[#allocation14 + $0x268] sm:$0xff] }
 0x904   :  { %v2123_v3 = vmax.f32 %v1935_v61, 0.0  ;;  %v4806_v61 = vld [vmem:[#allocation14 + $0x298] sm:$0xff] }
 0x906   :  { %v1920_v52 = vpop.f32.mrf.mxu3 }
 0x907   :  { %v1948_v59 = vpop.f32.mrf.mxu2  ;;  %v1921_v8 = vadd.f32 %v1920_v52, %v1226_v46  ;;  %v4790_v52 = vld [vmem:[#allocation14 + $0x218] sm:$0xff] }
 0x908   :  { %v1908_v6 = vpop.f32.mrf.mxu0  ;;  %v1949_v10 = vadd.f32 %v1948_v59, %v1228_v63 }
 0x909   :  { %v1909_v62 = vadd.f32 %v1908_v6, %v1225_v55  ;;  %v1936_v43 = vpop.f32.mrf.mxu1  ;;  %v2122_v23 = vmax.f32 %v1921_v8, 0.0 }
 0x90a   :  { %v1937_v0 = vadd.f32 %v1936_v43, %v1227_v56  ;;  %v2124_v27 = vmax.f32 %v1949_v10, 0.0 }
 0x90b   :  { %v2137_v2 = vmax.f32 %v1909_v62, 0.0 }
 0x90c   :  { %v2139_v5 = vmax.f32 %v1937_v0, 0.0  ;;  %v4815_v0 = vld [vmem:[#allocation14 + $0x2e0] sm:$0xff] }
 0x90d   :  { %v2153_v9 = vpack.c.bf16 %v2137_v2, %v2121_v1  ;;  %v4789_v2 = vld [vmem:[#allocation14 + $0x210] sm:$0xff] }
 0x90e   :  { %v2155_v11 = vpack.c.bf16 %v2139_v5, %v2123_v3  ;;  %v1922_v12 = vpop.f32.mrf.mxu3 }
 0x90f   :  { %v1923_v14 = vadd.f32 %v1922_v12, %v1226_v46  ;;  %v1950_v17 = vpop.f32.mrf.mxu2  ;;  %3204 = vmatmul.bf16.vlgmr.msra.gmra.mxu0 %v2153_v9 }
 0x910   :  { %v1951_v13 = vadd.f32 %v1950_v17, %v1228_v63  ;;  %3232 = vmatmul.bf16.vlgmr.msra.gmra.mxu1 %v2155_v11  ;;  %3308 = vmatpush.bf16.msra.mxu0 %v4794_v7  ;;  %v1962_v19 = vpop.f32.mrf.mxu0  ;;  %v4805_v7 = vld [vmem:[#allocation14 + $0x290] sm:$0xff]  ;;  %v4798_v11 = vld [vmem:[#allocation14 + $0x258] sm:$0xff] }
 0x911   :  { %v2138_v24 = vmax.f32 %v1923_v14, 0.0  ;;  %3336 = vmatpush.bf16.msra.mxu1 %v4810_v50  ;;  %v1990_v25 = vpop.f32.mrf.mxu1  ;;  %v1963_v37 = vadd.f32 %v1962_v19, %v1229_v31  ;;  %v5528_v50 = vld [vmem:[#allocation13 + $0x8] sm:$0xff]  ;;  %v4788_v19 = vld [vmem:[#allocation14 + $0x208] sm:$0xff] }
 0x912   :  { %v2140_v28 = vmax.f32 %v1951_v13, 0.0  ;;  %v1991_v18 = vadd.f32 %v1990_v25, %v1231_v33  ;;  %v4814_v17 = vld [vmem:[#allocation14 + $0x2d8] sm:$0xff]  ;;  %v4797_v25 = vld [vmem:[#allocation14 + $0x250] sm:$0xff] }
 0x913   :  { %v2154_v30 = vpack.c.bf16 %v2138_v24, %v2122_v23  ;;  %v2125_v47 = vmax.f32 %v1963_v37, 0.0  ;;  %v4804_v23 = vld [vmem:[#allocation14 + $0x288] sm:$0xff]  ;;  %v1235_v24 = vperm.slane %v5528_v50, 2 }
 0x914   :  { %v2156_v32 = vpack.c.bf16 %v2140_v28, %v2124_v27  ;;  %3309 = vmatpush.bf16.msra.mxu0 %v4793_v21  ;;  %v2127_v55 = vmax.f32 %v1991_v18, 0.0  ;;  %v1233_v21 = vperm.slane %v5528_v50, 0  ;;  %v4787_v28 = vld [vmem:[#allocation14 + $0x200] sm:$0xff] }
 0x915   :  { %3337 = vmatpush.bf16.msra.mxu1 %v4809_v26  ;;  %3218 = vmatmul.bf16.vlgmr.msrb.gmra.mxu3 %v2154_v30  ;;  %v4813_v26 = vld [vmem:[#allocation14 + $0x2d0] sm:$0xff] }
 0x916   :  { %3246 = vmatmul.bf16.vlgmr.msrb.gmra.mxu2 %v2156_v32  ;;  %3322 = vmatpush.bf16.msrb.mxu3 %v4802_v29  ;;  %v1976_v35 = vpop.f32.mrf.mxu3 }
 0x917   :  { %3350 = vmatpush.bf16.msrb.mxu2 %v4818_v15  ;;  %v2004_v38 = vpop.f32.mrf.mxu2  ;;  %v1977_v58 = vadd.f32 %v1976_v35, %v1230_v42  ;;  %v4826_v15 = vld [vmem:[#allocation14 + $0x338] sm:$0xff]  ;;  %v1234_v35 = vperm.slane %v5528_v50, 1 }
 0x918   :  { %3310 = vmatpush.bf16.msra.mxu0 %v4792_v22  ;;  %v1964_v40 = vpop.f32.mrf.mxu0  ;;  %v2005_v6 = vadd.f32 %v2004_v38, %v1232_v49  ;;  %v4842_v22 = vld [vmem:[#allocation14 + $0x3b8] sm:$0xff]  ;;  %v4812_v38 = vld [vmem:[#allocation14 + $0x2c8] sm:$0xff] }
 0x919   :  { %3338 = vmatpush.bf16.msra.mxu1 %v4808_v34  ;;  %v1965_v44 = vadd.f32 %v1964_v40, %v1229_v31  ;;  %v1992_v48 = vpop.f32.mrf.mxu1  ;;  %v2126_v3 = vmax.f32 %v1977_v58, 0.0  ;;  %v4803_v31 = vld [vmem:[#allocation14 + $0x280] sm:$0xff]  ;;  %v4796_v34 = vld [vmem:[#allocation14 + $0x248] sm:$0xff] }
 0x91a   :  { %v1993_v45 = vadd.f32 %v1992_v48, %v1231_v33  ;;  %3323 = vmatpush.bf16.msrb.mxu3 %v4801_v36  ;;  %v2128_v8 = vmax.f32 %v2005_v6, 0.0  ;;  %v4825_v48 = vld [vmem:[#allocation14 + $0x330] sm:$0xff]  ;;  %v4824_v6 = vld [vmem:[#allocation14 + $0x328] sm:$0xff] }
 0x91b   :  { %v2141_v4 = vmax.f32 %v1965_v44, 0.0  ;;  %3351 = vmatpush.bf16.msrb.mxu2 %v4817_v39  ;;  %v1236_v39 = vperm.slane %v5528_v50, 3 }
 0x91c   :  { %v2143_v56 = vmax.f32 %v1993_v45, 0.0  ;;  %3311 = vmatpush.bf16.msra.mxu0 %v4791_v41  ;;  %v4841_v45 = vld [vmem:[#allocation14 + $0x3b0] sm:$0xff] }
 0x91d   :  { %v2157_v59 = vpack.c.bf16 %v2141_v4, %v2125_v47  ;;  %3339 = vmatpush.bf16.msra.mxu1 %v4807_v60 }
 0x91e   :  { %v2159_v46 = vpack.c.bf16 %v2143_v56, %v2127_v55  ;;  %3324 = vmatpush.bf16.msrb.mxu3 %v4800_v16  ;;  %v1978_v62 = vpop.f32.mrf.mxu3  ;;  %v4795_v16 = vld [vmem:[#allocation14 + $0x240] sm:$0xff]  ;;  %v4834_v56 = vld [vmem:[#allocation14 + $0x378] sm:$0xff] }
 0x91f   :  { %3352 = vmatpush.bf16.msrb.mxu2 %v4816_v54  ;;  %v1979_v43 = vadd.f32 %v1978_v62, %v1230_v42  ;;  %v2006_v63 = vpop.f32.mrf.mxu2  ;;  %3260 = vmatmul.bf16.vlgmr.msrb.gmra.mxu0 %v2157_v59  ;;  %v4811_v55 = vld [vmem:[#allocation14 + $0x2c0] sm:$0xff]  ;;  %v4850_v59 = vld [vmem:[#allocation14 + $0x3f8] sm:$0xff] }
 0x920   :  { %v2007_v1 = vadd.f32 %v2006_v63, %v1232_v49  ;;  %3288 = vmatmul.bf16.vlgmr.msrb.gmra.mxu1 %v2159_v46  ;;  %3312 = vmatpush.bf16.msra.mxu0 %v4790_v52 }
 0x921   :  { %v2142_v5 = vmax.f32 %v1979_v43, 0.0  ;;  %3340 = vmatpush.bf16.msra.mxu1 %v4806_v61  ;;  %v2018_v10 = vpop.f32.mrf.mxu0 }
 0x922   :  { %v2144_v9 = vmax.f32 %v2007_v1, 0.0  ;;  %3325 = vmatpush.bf16.msrb.mxu3 %v4799_v53  ;;  %v2019_v29 = vadd.f32 %v2018_v10, %v1233_v21  ;;  %v4840_v53 = vld [vmem:[#allocation14 + $0x3a8] sm:$0xff]  ;;  %v4822_v10 = vld [vmem:[#allocation14 + $0x318] sm:$0xff] }
 0x923   :  { %v2158_v12 = vpack.c.bf16 %v2142_v5, %v2126_v3  ;;  %3353 = vmatpush.bf16.msrb.mxu2 %v4815_v0  ;;  %v4833_v0 = vld [vmem:[#allocation14 + $0x370] sm:$0xff]  ;;  %v4823_v5 = vld [vmem:[#allocation14 + $0x320] sm:$0xff] }
 0x924   :  { %v2046_v14 = vpop.f32.mrf.mxu1  ;;  %v2160_v13 = vpack.c.bf16 %v2144_v9, %v2128_v8  ;;  %3313 = vmatpush.bf16.msra.mxu0 %v4789_v2  ;;  %v2129_v40 = vmax.f32 %v2019_v29, 0.0  ;;  %v4849_v2 = vld [vmem:[#allocation14 + $0x3f0] sm:$0xff]  ;;  %v4832_v8 = vld [vmem:[#allocation14 + $0x368] sm:$0xff] }
 0x925   :  { %3341 = vmatpush.bf16.msra.mxu1 %v4805_v7  ;;  %3274 = vmatmul.bf16.vlgmr.msra.gmra.mxu3 %v2158_v12  ;;  %v2047_v32 = vadd.f32 %v2046_v14, %v1235_v24  ;;  %v4839_v7 = vld [vmem:[#allocation14 + $0x3a0] sm:$0xff]  ;;  %v4848_v9 = vld [vmem:[#allocation14 + $0x3e8] sm:$0xff]  ;;  %v4829_v29 = vld [vmem:[#allocation14 + $0x350] sm:$0xff] }
 0x926   :  { %3302 = vmatmul.bf16.vlgmr.msra.gmra.mxu2 %v2160_v13  ;;  %3326 = vmatpush.bf16.msrb.mxu3 %v4798_v11  ;;  %v4838_v11 = vld [vmem:[#allocation14 + $0x398] sm:$0xff]  ;;  %v4831_v12 = vld [vmem:[#allocation14 + $0x360] sm:$0xff] }
 0x927   :  { %3354 = vmatpush.bf16.msrb.mxu2 %v4814_v17  ;;  %v2032_v27 = vpop.f32.mrf.mxu3  ;;  %v2131_v42 = vmax.f32 %v2047_v32, 0.0  ;;  %v4847_v14 = vld [vmem:[#allocation14 + $0x3e0] sm:$0xff]  ;;  %v4821_v17 = vld [vmem:[#allocation14 + $0x310] sm:$0xff] }
 0x928   :  { %3314 = vmatpush.bf16.msra.mxu0 %v4788_v19  ;;  %v2033_v60 = vadd.f32 %v2032_v27, %v1234_v35  ;;  %v4837_v19 = vld [vmem:[#allocation14 + $0x390] sm:$0xff]  ;;  %v1239_v27 = vperm.slane %v5528_v50, 6 }
 0x929   :  { %3342 = vmatpush.bf16.msra.mxu1 %v4804_v23  ;;  %v2020_v33 = vpop.f32.mrf.mxu0  ;;  %v4830_v23 = vld [vmem:[#allocation14 + $0x358] sm:$0xff] }
 0x92a   :  { %v2060_v30 = vpop.f32.mrf.mxu2  ;;  %3327 = vmatpush.bf16.msrb.mxu3 %v4797_v25  ;;  %v2021_v36 = vadd.f32 %v2020_v33, %v1233_v21  ;;  %v2130_v46 = vmax.f32 %v2033_v60, 0.0  ;;  %v1237_v25 = vperm.slane %v5528_v50, 4  ;;  %v4819_v33 = vld [vmem:[#allocation14 + $0x300] sm:$0xff] }
 0x92b   :  { %3355 = vmatpush.bf16.msrb.mxu2 %v4813_v26  ;;  %v2061_v47 = vadd.f32 %v2060_v30, %v1236_v39  ;;  %v4820_v26 = vld [vmem:[#allocation14 + $0x308] sm:$0xff] }
 0x92c   :  { %v2048_v37 = vpop.f32.mrf.mxu1  ;;  %3315 = vmatpush.bf16.msra.mxu0 %v4787_v28  ;;  %v2145_v41 = vmax.f32 %v2021_v36, 0.0  ;;  %v4836_v28 = vld [vmem:[#allocation14 + $0x388] sm:$0xff]  ;;  %v1238_v36 = vperm.slane %v5528_v50, 5 }
 0x92d   :  { %v2049_v18 = vadd.f32 %v2048_v37, %v1235_v24  ;;  %3343 = vmatpush.bf16.msra.mxu1 %v4803_v31  ;;  %v2132_v43 = vmax.f32 %v2061_v47, 0.0  ;;  %v4846_v24 = vld [vmem:[#allocation14 + $0x3d8] sm:$0xff]  ;;  %v4845_v31 = vld [vmem:[#allocation14 + $0x3d0] sm:$0xff] }
 0x92e   :  { %3328 = vmatpush.bf16.msrb.mxu3 %v4796_v34  ;;  %v2161_v49 = vpack.c.bf16 %v2145_v41, %v2129_v40  ;;  %v4844_v41 = vld [vmem:[#allocation14 + $0x3c8] sm:$0xff] }
 0x92f   :  { %v2147_v44 = vmax.f32 %v2049_v18, 0.0  ;;  %3356 = vmatpush.bf16.msrb.mxu2 %v4812_v38  ;;  %v2034_v54 = vpop.f32.mrf.mxu3  ;;  %v1240_v18 = vperm.slane %v5528_v50, 7 }
 0x930   :  { %3364 = vmatpush.bf16.msrb.mxu0 %v4826_v15  ;;  %v2035_v52 = vadd.f32 %v2034_v54, %v1234_v35  ;;  %v4835_v35 = vld [vmem:[#allocation14 + $0x380] sm:$0xff] }
 0x931   :  { %3392 = vmatpush.bf16.msrb.mxu1 %v4842_v22  ;;  %v2163_v4 = vpack.c.bf16 %v2147_v44, %v2131_v42  ;;  %3316 = vmatmul.bf16.vlgmr.msra.gmra.mxu0 %v2161_v49 }
 0x932   :  { %v2062_v58 = vpop.f32.mrf.mxu2  ;;  %v2146_v62 = vmax.f32 %v2035_v52, 0.0  ;;  %3329 = vmatpush.bf16.msrb.mxu3 %v4795_v16  ;;  %v4827_v16 = vld [vmem:[#allocation14 + $0x340] sm:$0xff] }
 0x933   :  { %v2063_v61 = vadd.f32 %v2062_v58, %v1236_v39  ;;  %3344 = vmatmul.bf16.vlgmr.msra.gmra.mxu1 %v2163_v4  ;;  %3357 = vmatpush.bf16.msrb.mxu2 %v4811_v55  ;;  %v4828_v39 = vld [vmem:[#allocation14 + $0x348] sm:$0xff]  ;;  %v4843_v55 = vld [vmem:[#allocation14 + $0x3c0] sm:$0xff] }
 0x934   :  { %3365 = vmatpush.bf16.msrb.mxu0 %v4825_v48  ;;  %v2162_v1 = vpack.c.bf16 %v2146_v62, %v2130_v46 }
 0x935   :  { %3393 = vmatpush.bf16.msrb.mxu1 %v4841_v45  ;;  %v2148_v63 = vmax.f32 %v2063_v61, 0.0 }
 0x936   :  { %3378 = vmatpush.bf16.msra.mxu3 %v4834_v56 }
 0x937   :  { %3406 = vmatpush.bf16.msra.mxu2 %v4850_v59  ;;  %v2164_v3 = vpack.c.bf16 %v2148_v63, %v2132_v43  ;;  %3330 = vmatmul.bf16.vlgmr.msrb.gmra.mxu3 %v2162_v1 }
 0x938   :  { %3366 = vmatpush.bf16.msrb.mxu0 %v4824_v6 }
 0x939   :  { %3394 = vmatpush.bf16.msrb.mxu1 %v4840_v53  ;;  %3358 = vmatmul.bf16.vlgmr.msrb.gmra.mxu2 %v2164_v3 }
 0x93a   :  { %3379 = vmatpush.bf16.msra.mxu3 %v4833_v0 }
 0x93b   :  { %3407 = vmatpush.bf16.msra.mxu2 %v4849_v2 }
 0x93c   :  { %3367 = vmatpush.bf16.msrb.mxu0 %v4823_v5 }
 0x93d   :  { %3395 = vmatpush.bf16.msrb.mxu1 %v4839_v7  ;;  %v4875_v7 = vld [vmem:[%s5579_s12] ss:$0 sm:$0xff] }
 0x93e   :  { %3380 = vmatpush.bf16.msra.mxu3 %v4832_v8 }
 0x93f   :  { %3408 = vmatpush.bf16.msra.mxu2 %v4848_v9 }
 0x940   :  { %3368 = vmatpush.bf16.msrb.mxu0 %v4822_v10 }
 0x941   :  { %v2074_v13 = vpop.f32.mrf.mxu0  ;;  %3396 = vmatpush.bf16.msrb.mxu1 %v4838_v11 }
 0x942   :  { %v2102_v21 = vpop.f32.mrf.mxu1  ;;  %3381 = vmatpush.bf16.msra.mxu3 %v4831_v12  ;;  %v2075_v15 = vadd.f32 %v2074_v13, %v1237_v25 }
 0x943   :  { %3409 = vmatpush.bf16.msra.mxu2 %v4847_v14  ;;  %v2103_v22 = vadd.f32 %v2102_v21, %v1239_v27 }
 0x944   :  { %3369 = vmatpush.bf16.msrb.mxu0 %v4821_v17  ;;  %v2133_v42 = vmax.f32 %v2075_v15, 0.0 }
 0x945   :  { %3397 = vmatpush.bf16.msrb.mxu1 %v4837_v19  ;;  %v2135_v48 = vmax.f32 %v2103_v22, 0.0 }
 0x946   :  { %3382 = vmatpush.bf16.msra.mxu3 %v4830_v23 }
 0x947   :  { %v2088_v30 = vpop.f32.mrf.mxu3  ;;  %3410 = vmatpush.bf16.msra.mxu2 %v4846_v24 }
 0x948   :  { %3370 = vmatpush.bf16.msrb.mxu0 %v4820_v26  ;;  %v2089_v49 = vadd.f32 %v2088_v30, %v1238_v36 }
 0x949   :  { %v2116_v32 = vpop.f32.mrf.mxu2  ;;  %v2076_v34 = vpop.f32.mrf.mxu0  ;;  %3398 = vmatpush.bf16.msrb.mxu1 %v4836_v28 }
 0x94a   :  { %v2077_v37 = vadd.f32 %v2076_v34, %v1237_v25  ;;  %v2104_v38 = vpop.f32.mrf.mxu1  ;;  %3383 = vmatpush.bf16.msra.mxu3 %v4829_v29  ;;  %v2117_v47 = vadd.f32 %v2116_v32, %v1240_v18  ;;  %v2134_v58 = vmax.f32 %v2089_v49, 0.0 }
 0x94b   :  { %v2105_v40 = vadd.f32 %v2104_v38, %v1239_v27  ;;  %3411 = vmatpush.bf16.msra.mxu2 %v4845_v31 }
 0x94c   :  { %v2149_v44 = vmax.f32 %v2077_v37, 0.0  ;;  %3371 = vmatpush.bf16.msrb.mxu0 %v4819_v33  ;;  %v2136_v61 = vmax.f32 %v2117_v47, 0.0 }
 0x94d   :  { %v2151_v60 = vmax.f32 %v2105_v40, 0.0  ;;  %3399 = vmatpush.bf16.msrb.mxu1 %v4835_v35 }
 0x94e   :  { %v2165_v45 = vpack.c.bf16 %v2149_v44, %v2133_v42  ;;  %3384 = vmatpush.bf16.msra.mxu3 %v4828_v39 }
 0x94f   :  { %v2167_v4 = vpack.c.bf16 %v2151_v60, %v2135_v48  ;;  %v2090_v54 = vpop.f32.mrf.mxu3  ;;  %3412 = vmatpush.bf16.msra.mxu2 %v4844_v41 }
 0x950   :  { %v2091_v56 = vadd.f32 %v2090_v54, %v1238_v36  ;;  %3372 = vmatmul.bf16.vlgmr.msrb.gmra.mxu0 %v2165_v45 }
 0x951   :  { %v2118_v50 = vpop.f32.mrf.mxu2  ;;  %3400 = vmatmul.bf16.vlgmr.msrb.gmra.mxu1 %v2167_v4 }
 0x952   :  { %v2119_v52 = vadd.f32 %v2118_v50, %v1240_v18  ;;  %v2150_v59 = vmax.f32 %v2091_v56, 0.0  ;;  %3385 = vmatpush.bf16.msra.mxu3 %v4827_v16 }
 0x953   :  { %3413 = vmatpush.bf16.msra.mxu2 %v4843_v55 }
 0x954   :  { %v2152_v6 = vmax.f32 %v2119_v52, 0.0  ;;  %v2166_v46 = vpack.c.bf16 %v2150_v59, %v2134_v58 }
 0x956   :  { %v2168_v62 = vpack.c.bf16 %v2152_v6, %v2136_v61  ;;  %3386 = vmatmul.bf16.vlgmr.msra.gmra.mxu3 %v2166_v46 }
 0x958   :  { %3414 = vmatmul.bf16.vlgmr.msra.gmra.mxu2 %v2168_v62 }
 0x98c   :  { %v3205_v53 = vpop.f32.mrf.mxu0 }
 0x98d   :  { %v3233_v43 = vpop.f32.mrf.mxu1  ;;  %v3206_v9 = vadd.f32 %v4875_v7, %v3205_v53 }
 0x994   :  { %v3207_v1 = vpop.f32.mrf.mxu0 }
 0x995   :  { %v3235_v2 = vpop.f32.mrf.mxu1  ;;  %v3208_v19 = vadd.f32 %v4875_v7, %v3207_v1 }
 0x998   :  { %v3219_v63 = vpop.f32.mrf.mxu3 }
 0x999   :  { %v3247_v0 = vpop.f32.mrf.mxu2  ;;  %v3220_v10 = vadd.f32 %v3219_v63, %v3206_v9 }
 0x99b   :  { %v3234_v17 = vadd.f32 %v3233_v43, %v3220_v10 }
 0x99c   :  { %v3261_v8 = vpop.f32.mrf.mxu0 }
 0x99d   :  { %v3289_v11 = vpop.f32.mrf.mxu1  ;;  %v3248_v21 = vadd.f32 %v3247_v0, %v3234_v17  ;;  %v3484_v17 = vld [vmem:[#allocation16 + $0x60] sm:$0xff] }
 0x99f   :  { %v3262_v26 = vadd.f32 %v3261_v8, %v3248_v21  ;;  %v3481_v21 = vld [vmem:[#allocation16 + $0x48] sm:$0xff] }
 0x9a0   :  { %v3221_v3 = vpop.f32.mrf.mxu3 }
 0x9a1   :  { %v3249_v5 = vpop.f32.mrf.mxu2  ;;  %v3222_v23 = vadd.f32 %v3221_v3, %v3208_v19  ;;  %v3487_v3 = vld [vmem:[#allocation16 + $0x78] sm:$0xff]  ;;  %v3482_v19 = vld [vmem:[#allocation16 + $0x50] sm:$0xff] }
 0x9a2   :  { %3491 = vmatpush.msra.mxu0 %v3487_v3 }
 0x9a3   :  { %v3236_v27 = vadd.f32 %v3235_v2, %v3222_v23  ;;  %v3480_v23 = vld [vmem:[#allocation16 + $0x40] sm:$0xff] }
 0x9a4   :  { %v3263_v13 = vpop.f32.mrf.mxu0 }
 0x9a5   :  { %v3291_v24 = vpop.f32.mrf.mxu1  ;;  %v3250_v31 = vadd.f32 %v3249_v5, %v3236_v27  ;;  %v3486_v5 = vld [vmem:[#allocation16 + $0x70] sm:$0xff]  ;;  %v3476_v27 = vld [vmem:[#allocation16 + $0x20] sm:$0xff] }
 0x9a6   :  { %3492 = vmatpush.msra.mxu0 %v3486_v5 }
 0x9a7   :  { %v3264_v32 = vadd.f32 %v3263_v13, %v3250_v31  ;;  %v3483_v13 = vld [vmem:[#allocation16 + $0x58] sm:$0xff]  ;;  %v3472_v31 = vld [vmem:[#allocation16] sm:$0xff] }
 0x9a8   :  { %v3275_v12 = vpop.f32.mrf.mxu3 }
 0x9a9   :  { %v3303_v14 = vpop.f32.mrf.mxu2  ;;  %v3276_v29 = vadd.f32 %v3275_v12, %v3262_v26  ;;  %v3477_v26 = vld [vmem:[#allocation16 + $0x28] sm:$0xff] }
 0x9ab   :  { %v3290_v15 = vadd.f32 %v3289_v11, %v3276_v29  ;;  %v3474_v29 = vld [vmem:[#allocation16 + $0x10] sm:$0xff] }
 0x9ad   :  { %v3304_v34 = vadd.f32 %v3303_v14, %v3290_v15 }
 0x9ae   :  { %v3317_v30 = vpop.f32.mrf.mxu0 }
 0x9af   :  { %v3318_v38 = vadd.f32 %v3317_v30, %v3304_v34  ;;  %v3473_v30 = vld [vmem:[#allocation16 + $0x8] sm:$0xff] }
 0x9b0   :  { %v3277_v25 = vpop.f32.mrf.mxu3  ;;  %v3345_v33 = vpop.f32.mrf.mxu1 }
 0x9b1   :  { %v3305_v28 = vpop.f32.mrf.mxu2  ;;  %v3278_v35 = vadd.f32 %v3277_v25, %v3264_v32  ;;  %v3478_v25 = vld [vmem:[#allocation16 + $0x30] sm:$0xff] }
 0x9b3   :  { %v3292_v39 = vadd.f32 %v3291_v24, %v3278_v35  ;;  %v3479_v24 = vld [vmem:[#allocation16 + $0x38] sm:$0xff] }
 0x9b5   :  { %v3306_v40 = vadd.f32 %v3305_v28, %v3292_v39  ;;  %v3475_v28 = vld [vmem:[#allocation16 + $0x18] sm:$0xff] }
 0x9b6   :  { %v3319_v37 = vpop.f32.mrf.mxu0 }
 0x9b7   :  { %v3320_v49 = vadd.f32 %v3319_v37, %v3306_v40 }
 0x9b8   :  { %v3347_v41 = vpop.f32.mrf.mxu1 }
 0x9ba   :  { %v3331_v22 = vpop.f32.mrf.mxu3 }
 0x9bb   :  { %v3332_v18 = vadd.f32 %v3331_v22, %v3318_v38 }
 0x9bc   :  { %v3359_v36 = vpop.f32.mrf.mxu2 }
 0x9bd   :  { %v3346_v44 = vadd.f32 %v3345_v33, %v3332_v18 }
 0x9bf   :  { %v3360_v45 = vadd.f32 %v3359_v36, %v3346_v44  ;;  %v4876_v44 = vld [vmem:[%s5580_s13] ss:$0 sm:$0xff] }
 0x9c2   :  { %v3333_v42 = vpop.f32.mrf.mxu3 }
 0x9c3   :  { %v3334_v16 = vadd.f32 %v3333_v42, %v3320_v49  ;;  %v4877_v49 = vld [vmem:[%s5581_s14] ss:$0 sm:$0xff]  ;;  %s5192_s14 = smov [#allocation17]  }
 0x9c4   :  { %v3361_v48 = vpop.f32.mrf.mxu2  ;;  %s3520_s22 = sshll.u32 %s5192_s14, 4  ;;  %s3521_s22 = int_to_ptr.vmem [resolvable:$true] %s3520_s22 }
 0x9c5   :  { %v3348_v55 = vadd.f32 %v3347_v41, %v3334_v16 }
 0x9c7   :  { %v3362_v59 = vadd.f32 %v3361_v48, %v3348_v55 }
 0x9cd   :  { %v3373_v60 = vpop.f32.mrf.mxu0 }
 0x9ce   :  { %v3374_v47 = vadd.f32 %v3373_v60, %v3360_v45  ;;  %v3401_v4 = vpop.f32.mrf.mxu1 }
 0x9d5   :  { %v3375_v58 = vpop.f32.mrf.mxu0 }
 0x9d6   :  { %v3376_v6 = vadd.f32 %v3375_v58, %v3362_v59  ;;  %v3403_v43 = vpop.f32.mrf.mxu1  ;;  %v4878_v58 = vld [vmem:[%s5583_s16] ss:$0 sm:$0xff] }
 0x9d9   :  { %v3387_v54 = vpop.f32.mrf.mxu3 }
 0x9da   :  { %v3388_v56 = vadd.f32 %v3387_v54, %v3374_v47 }
 0x9db   :  { %v3415_v50 = vpop.f32.mrf.mxu2 }
 0x9dc   :  { %v3402_v52 = vadd.f32 %v3401_v4, %v3388_v56 }
 0x9de   :  { %v3416_v61 = vadd.f32 %v3415_v50, %v3402_v52 }
 0x9e0   :  { %v3420_v46 = vadd.f32 %v3416_v61, %v5494_v20 }
 0x9e1   :  { %v3389_v62 = vpop.f32.mrf.mxu3 }
 0x9e2   :  { %v3390_v53 = vadd.f32 %v3389_v62, %v3376_v6  ;;  %3422 = vadd.xlane.f32.xlu1 %v3420_v46 }
 0x9e3   :  { %v3417_v0 = vpop.f32.mrf.mxu2 }
 0x9e4   :  { %v3404_v63 = vadd.f32 %v3403_v43, %v3390_v53 }
 0x9e6   :  { %v3418_v1 = vadd.f32 %v3417_v0, %v3404_v63 }
 0x9e8   :  { %v3421_v2 = vadd.f32 %v3418_v1, %v5496_v57  ;;  %v3485_v57 = vld [vmem:[#allocation16 + $0x68] sm:$0xff] }
 0x9e9   :  { %3493 = vmatpush.msra.mxu0 %v3485_v57 }
 0x9ea   :  { %3424 = vadd.xlane.f32.xlu0 %v3421_v2 }
 0x9eb   :  { %3494 = vmatpush.msra.mxu0 %v3484_v17 }
 0x9ed   :  { %3495 = vmatpush.msra.mxu0 %v3483_v13 }
 0x9ef   :  { %3496 = vmatpush.msra.mxu0 %v3482_v19 }
 0x9f1   :  { %3497 = vmatpush.msra.mxu0 %v3481_v21 }
 0x9f3   :  { %3498 = vmatpush.msra.mxu0 %v3480_v23 }
 0x9f5   :  { %3499 = vmatpush.msra.mxu0 %v3479_v24 }
 0x9f7   :  { %3500 = vmatpush.msra.mxu0 %v3478_v25 }
 0x9f9   :  { %3501 = vmatpush.msra.mxu0 %v3477_v26 }
 0x9fb   :  { %3502 = vmatpush.msra.mxu0 %v3476_v27 }
 0x9fd   :  { %3503 = vmatpush.msra.mxu0 %v3475_v28 }
 0x9ff   :  { %3504 = vmatpush.msra.mxu0 %v3474_v29 }
 0xa01   :  { %3505 = vmatpush.msra.mxu0 %v3473_v30 }
 0xa03   :  { %3506 = vmatpush.msra.mxu0 %v3472_v31 }
 0xa55   :  { %v3423_v7 = vpop.xlane.xlu1 %3422 }
 0xa56   :  { %v3426_v8 = vmul.f32 %v3423_v7, %v5470_v51 }
 0xa58   :  { %v3428_v9 = vsub.f32 %v3420_v46, %v3426_v8 }
 0xa5a   :  { %v3430_v10 = vmul.f32 %v3428_v9, %v3428_v9 }
 0xa5c   :  { %3432 = vadd.xlane.f32.xlu1 %v3430_v10 }
 0xa5d   :  { %v3425_v20 = vpop.xlane.xlu0 %3424 }
 0xa5e   :  { %v3427_v11 = vmul.f32 %v3425_v20, %v5470_v51 }
 0xa60   :  { %v5545_v12 = vsub.f32 %v3421_v2, %v3427_v11 }
 0xa62   :  { %v3431_v14 = vmul.f32 %v5545_v12, %v5545_v12 }
 0xa64   :  { %3434 = vadd.xlane.f32.xlu2 %v3431_v14 }
 0xacf   :  { %v3433_v15 = vpop.xlane.xlu1 %3432 }
 0xad0   :  { %v3436_v32 = vmul.f32 %v3433_v15, %v5470_v51 }
 0xad2   :  { %v3438_v33 = vadd.f32 1e-05, %v3436_v32 }
 0xad4   :  { %4917 = vrsqrt.f32 %v3438_v33  ;;  %vm3446_vm10 = vweird.f32 %v3438_v33 }
 0xad7   :  { %v3435_v22 = vpop.xlane.xlu2 %3434 }
 0xad8   :  { %v3437_v34 = vmul.f32 %v3435_v22, %v5470_v51 }
 0xada   :  { %v4918_v35 = vpop.eup %4917  ;;  %v3439_v36 = vadd.f32 1e-05, %v3437_v34 }
 0xadb   :  { %v3441_v37 = vmul.f32 %v4918_v35, %v3438_v33  ;;  %vm3447_vm9 = vweird.f32 %v4918_v35 }
 0xadc   :  { %4919 = vrsqrt.f32 %v3439_v36  ;;  %vm3448_vm11 = vmor %vm3446_vm10, %vm3447_vm9  ;;  %vm3456_vm13 = vweird.f32 %v3439_v36 }
 0xadd   :  { %v3442_v38 = vmul.f32 %v4918_v35, %v3441_v37 }
 0xadf   :  { %v3443_v39 = vmul.f32 0.5, %v3442_v38 }
 0xae1   :  { %v3444_v18 = vsub.f32 1.5, %v3443_v39 }
 0xae2   :  { %v4920_v40 = vpop.eup %4919 }
 0xae3   :  { %v3445_v41 = vmul.f32 %v4918_v35, %v3444_v18  ;;  %v3451_v42 = vmul.f32 %v4920_v40, %v3439_v36  ;;  %vm3457_vm12 = vweird.f32 %v4920_v40 }
 0xae4   :  { %vm3458_vm14 = vmor %vm3456_vm13, %vm3457_vm12 }
 0xae5   :  { %v3449_v48 = vsel %vm3448_vm11, %v4918_v35, %v3445_v41  ;;  %v3452_v60 = vmul.f32 %v4920_v40, %v3451_v42 }
 0xae6   :  { %v3460_v51 = vmul.f32 %v3449_v48, %v3428_v9 }
 0xae7   :  { %v3453_v45 = vmul.f32 0.5, %v3452_v60 }
 0xae8   :  { %v3465_v16 = vmul.f32 %v4876_v44, %v3460_v51 }
 0xae9   :  { %v3454_v47 = vsub.f32 1.5, %v3453_v45 }
 0xaea   :  { %v3470_v4 = vadd.f32 %v4877_v49, %v3465_v16 }
 0xaeb   :  { %v3455_v54 = vmul.f32 %v4920_v40, %v3454_v47 }
 0xaec   :  { %3507 = vmatmul.f32.vlgmr.msra.gmra.mxu0 %v3470_v4 }
 0xaed   :  { %v3459_v55 = vsel %vm3458_vm14, %v4920_v40, %v3455_v54 }
 0xaee   :  { %v3461_v56 = vmul.f32 %v3459_v55, %v5545_v12 }
 0xaf0   :  { %v3466_v50 = vmul.f32 %v4876_v44, %v3461_v56 }
 0xaf2   :  { %v3471_v52 = vadd.f32 %v4877_v49, %v3466_v50 }
 0xaf4   :  { %3510 = vmatmul.f32.gmra.mxu0 %v3471_v52 }
 0xb69   :  { %v3508_v59 = vpop.f32.mrf.mxu0 }
 0xb6a   :  { %v3509_v61 = vadd.f32 %v4878_v58, %v3508_v59 }
 0xb6c   :  { %3514 = vst [vmem:[#allocation17] sm:$0xff] %v3509_v61 }
 0xb71   :  { %v3511_v6 = vpop.f32.mrf.mxu0 }
 0xb72   :  { %v3512_v46 = vadd.f32 %v4878_v58, %v3511_v6 }
 0xb74   :  { %3515 = vst [vmem:[#allocation17 + $0x8] sm:$0xff] %v3512_v46 }
 0xb75   :  { %3528 = dma.vmem_to_hbm [thread:$0]  %s3521_s22, 256, %s3523_s5, [#allocation4], %s5592_s26, %s5592_s26, %s5175_s1  }
 0xb76   :  { %5171 = dma.done.wait [#allocation4], 256  }
 0xb77   :  { %5172 = vsyncadd [#allocation4], 4294967040 }
 0xb78   :  { %3533 = vsyncpa [#allocation3], 1 }
 0xb79   :  { %3534 = vsyncpa [#allocation6], 1 }
 0xb7a   :  { %3535 = vsyncpa [#allocation9], 1 }
 0xb7b   :  { %3536 = vsyncpa [#allocation12], 1 }
 0xb7c   :  { %3537 = vsyncpa [#allocation15], 1 }
 0xb7d   :  { %3538 = vsyncpa [#allocation4], 1 }

</bundles_post_ra>
